<compile_context>
chip_gen: v7x
topology: tpu7x:2x2x1
jax: 0.10.0
libtpu: 0.0.40
codegen_flags: <defaults>
</compile_context>

<pallas_src>
import jax
import jax.numpy as jnp
from jax import lax
from jax.experimental import pallas as pl
from jax.experimental.pallas import tpu as pltpu

IMAGE_SIZE = 16          # args.image_size
BATCH = 2                # args.batch_size
CHANNELS = 3             # RGB input expected by ResNet
C_PAD = 8                # channels zero-padded to a full sublane group
NUM_FEATURES = 32        # stand-in for resnet101 fc.in_features (=2048)
NUM_CLASSES = 16         # stand-in for 1000 ImageNet classes
DOWNSCALE = 0.33


# ----------------------------------------------------------------------------
# Fused Pallas kernel (one grid step == one batch element)
# ----------------------------------------------------------------------------

def _make_fused_kernel(H, W, Cp, F, NC):
    HW = H * W
    OUT_LANES = 128

    def build_taps(img, mask_ref):
        """img: (Cp, HW) f32 -> (9*Cp, HW) bf16 : 3x3/stride-1/zero-pad-1 taps.

        Taps are formed with pltpu.roll (XLU) on the flattened image; border
        wraparound is zeroed by the precomputed (batch-invariant) masks. Row
        order is (dh, dw, c) with c padded to Cp, matching the packed weights.
        Elementwise work stays f32 (v5e has no native bf16 VPU); one cast at
        the matmul boundary."""
        taps = []
        t = 0
        for dh in (-1, 0, 1):
            for dw in (-1, 0, 1):
                s = dh * W + dw                       # flattened source offset
                shifted = img if s == 0 else pltpu.roll(img, (-s) % HW, axis=1)
                taps.append(shifted * mask_ref[t:t + 1, :])
                t += 1
        return jnp.concatenate(taps, axis=0).astype(jnp.bfloat16)   # (9*Cp, HW)

    def build_col_matrix(zx, d00):
        """CX: (W_in, W_out) bilinear column-sampling matrix for
        F.grid_sample(F.affine_grid([[d00,0,zx],[0,d11,zy]])), align_corners=False,
        padding_mode='zeros'. Assumes the off-diagonal of downscale is 0
        (true for the reference 0.33*I), which makes the sampling separable."""
        wo = lax.broadcasted_iota(jnp.int32, (1, W), 1).astype(jnp.float32)
        xn = (2.0 * wo + 1.0) / W - 1.0
        gx = d00 * xn + zx                            # (1, W)
        ix = ((gx + 1.0) * W - 1.0) * 0.5
        ix0 = jnp.floor(ix)
        ix1 = ix0 + 1.0
        wx1 = ix - ix0
        wx0 = 1.0 - wx1
        in_col = lax.broadcasted_iota(jnp.int32, (W, W), 0)   # input column index

        def corner(cp, cw):
            valid = (cp >= 0.0) & (cp <= W - 1.0)
            xi = jnp.clip(cp, 0.0, W - 1.0).astype(jnp.int32)
            weff = jnp.where(valid, cw, 0.0)
            return jnp.where(in_col == xi, weff, 0.0)

        return corner(ix0, wx0) + corner(ix1, wx1)    # (W_in, W_out)

    def build_row_matrix(zy, d11):
        """RYT: (H_out, H_in) bilinear row-sampling matrix (transposed form so
        it left-multiplies as a standard batched matmul)."""
        ho = lax.broadcasted_iota(jnp.int32, (H, 1), 0).astype(jnp.float32)
        yn = (2.0 * ho + 1.0) / H - 1.0
        gy = d11 * yn + zy                            # (H, 1)
        iy = ((gy + 1.0) * H - 1.0) * 0.5
        iy0 = jnp.floor(iy)
        iy1 = iy0 + 1.0
        wy1 = iy - iy0
        wy0 = 1.0 - wy1
        in_row = lax.broadcasted_iota(jnp.int32, (H, H), 1)   # input row index

        def corner(cp, cw):
            valid = (cp >= 0.0) & (cp <= H - 1.0)
            yi = jnp.clip(cp, 0.0, H - 1.0).astype(jnp.int32)
            weff = jnp.where(valid, cw, 0.0)
            return jnp.where(in_row == yi, weff, 0.0)

        return corner(iy0, wy0) + corner(iy1, wy1)    # (H_out, H_in)

    def kernel(x_ref, mask_ref, wwh_ref, bwh_ref, muw_ref, mub_ref, ds_ref,
               swt_ref, wcl_ref, bcl_ref, fcw_ref, fcb_ref, lf_ref, out_ref):
        x = x_ref[0]                                             # (Cp, HW) f32

        # ---- "where" pathway: conv3x3 + ReLU + GAP stand-in, then mu linear ----
        taps = build_taps(x, mask_ref)                           # (9Cp, HW) bf16
        h = jnp.dot(wwh_ref[...], taps,
                    preferred_element_type=jnp.float32) + bwh_ref[...]
        h = jnp.maximum(h, 0.0)                                  # (F, HW) lane-dense
        # Linear and global-average-pool commute: mu_w @ mean(h) == mean(mu_w @ h)
        z = jnp.mean(jnp.dot(muw_ref[...], h.astype(jnp.bfloat16),
                             preferred_element_type=jnp.float32),
                     axis=1, keepdims=True) + mub_ref[...]       # (2, 1) == mu == z
        zx = z[0:1, 0:1]
        zy = z[1:2, 0:1]

        # ---- F.affine_grid + F.grid_sample (shift), separable form ----
        # (exact because theta's linear part is diagonal in the reference)
        ryt = build_row_matrix(zy, ds_ref[1:2, 1:2]).astype(jnp.bfloat16)  # (H,H)
        cxm = build_col_matrix(zx, ds_ref[0:1, 0:1]).astype(jnp.bfloat16)  # (W,W)
        x3 = x.reshape(Cp, H, W).astype(jnp.bfloat16)
        ryt_b = jnp.broadcast_to(ryt[None], (Cp, H, H))
        cx_b = jnp.broadcast_to(cxm[None], (Cp, W, W))
        t1 = jnp.einsum('bhk,bkw->bhw', ryt_b, x3,
                        preferred_element_type=jnp.float32)      # row mix
        xs3 = jnp.einsum('bhk,bkw->bhw', t1.astype(jnp.bfloat16), cx_b,
                         preferred_element_type=jnp.float32)     # column mix
        x_shift = xs3.reshape(Cp, HW)                            # (Cp, HW) f32

        # ---- F.grid_sample with the shared log-polar "what" matrix (bf16) ----
        logpol = jnp.dot(x_shift.astype(jnp.bfloat16), swt_ref[...],
                         preferred_element_type=jnp.float32)     # (Cp, HW)

        # ---- "what" classifier pathway (label_filter is zeros in the
        #      reference, but the path is kept for forward-semantics parity) ----
        taps2 = build_taps(logpol, mask_ref)
        h2 = jnp.dot(wcl_ref[...], taps2,
                     preferred_element_type=jnp.float32) + bcl_ref[...]
        h2 = jnp.maximum(h2, 0.0)                                # (F, HW)
        logits = jnp.mean(jnp.dot(fcw_ref[...], h2.astype(jnp.bfloat16),
                                  preferred_element_type=jnp.float32),
                          axis=1, keepdims=True) + fcb_ref[...]  # (NC, 1)
        y = logits * lf_ref[...]                                 # (NC, 1)

        # ---- pack (z | y) into one lane-dense (1, 128) output row ----
        col = jnp.concatenate([z, y], axis=0)                    # (2+NC, 1)
        sub = lax.broadcasted_iota(jnp.int32, (2 + NC, OUT_LANES), 0)
        lane = lax.broadcasted_iota(jnp.int32, (2 + NC, OUT_LANES), 1)
        out_ref[0] = jnp.sum(jnp.where(sub == lane, col, 0.0),
                             axis=0, keepdims=True)              # (1, 128)

    return kernel


def fused_forward(x_pad, masks, wwh, bwh, muw, mub, ds, swt, wcl, bcl, fcw, fcb, lf):
    """x_pad: (B, Cp, HW) f32 (channels zero-padded). Returns (B, 1, 128) f32
    with z in lanes 0:2 and y in lanes 2:2+NC."""
    B, Cp, HW = x_pad.shape
    F = bwh.shape[0]
    NC = fcw.shape[0]
    H = W = int(round(HW ** 0.5))
    assert H * W == HW
    assert 2 + NC <= 128
    K = 9 * Cp
    kernel = _make_fused_kernel(H, W, Cp, F, NC)

    def fixed(shape):
        return pl.BlockSpec(shape, lambda b, _n=len(shape): (0,) * _n)

    in_specs = [
        pl.BlockSpec((1, Cp, HW), lambda b: (b, 0, 0)),  # per-batch image slice
        fixed((9, HW)),                                  # hoisted tap masks
        fixed((F, K)), fixed((F, 1)),                    # conv_where (bf16 w)
        fixed((2, F)), fixed((2, 1)),                    # mu (bf16 w)
        fixed((2, 2)),                                   # downscale
        fixed((HW, HW)),                                 # shared log-polar S^T (bf16)
        fixed((F, K)), fixed((F, 1)),                    # conv_cls (bf16 w)
        fixed((NC, F)), fixed((NC, 1)),                  # fc (bf16 w)
        fixed((NC, 1)),                                  # label_filter
    ]
    out_specs = pl.BlockSpec((1, 1, 128), lambda b: (b, 0, 0))
    out_shape = jax.ShapeDtypeStruct((B, 1, 128), jnp.float32)
    return pl.pallas_call(
        kernel,
        grid=(B,),
        in_specs=in_specs,
        out_specs=out_specs,
        out_shape=out_shape,
        compiler_params=pltpu.CompilerParams(
            dimension_semantics=("parallel",)),          # v7x: one batch per TC
    )(x_pad, masks, wwh, bwh, muw, mub, ds, swt, wcl, bcl, fcw, fcb, lf)


# ----------------------------------------------------------------------------
# Init-time helpers (pure JAX, run once)
# ----------------------------------------------------------------------------

def log_polar_grid(a, b, H, W, base=2.0):
    """logPolarGrid(0, -5): logspace radii x (cos, sin) angles -> (H, W, 2)."""
    rs = jnp.power(base, jnp.linspace(float(a), float(b), H))
    ts = jnp.linspace(0.0, 2.0 * jnp.pi, W)      # inclusive endpoints, as torch.linspace
    gx = jnp.outer(rs, jnp.cos(ts))
    gy = jnp.outer(rs, jnp.sin(ts))
    return jnp.stack([gx, gy], axis=-1)


def build_sample_matrix(grid, H_in, W_in):
    """Dense bilinear matrix for F.grid_sample (bilinear, zeros padding,
    align_corners=False). grid: (Ho, Wo, 2) -> S: (Ho*Wo, H_in*W_in). Init only."""
    Ho, Wo, _ = grid.shape
    gx = grid[..., 0].reshape(Ho * Wo)
    gy = grid[..., 1].reshape(Ho * Wo)
    ix = ((gx + 1.0) * W_in - 1.0) * 0.5
    iy = ((gy + 1.0) * H_in - 1.0) * 0.5
    ix0 = jnp.floor(ix)
    iy0 = jnp.floor(iy)
    ix1 = ix0 + 1.0
    iy1 = iy0 + 1.0
    wx1 = ix - ix0
    wx0 = 1.0 - wx1
    wy1 = iy - iy0
    wy0 = 1.0 - wy1

    def contrib(xi, yi, w):
        valid = (xi >= 0) & (xi <= W_in - 1) & (yi >= 0) & (yi <= H_in - 1)
        xi_c = jnp.clip(xi, 0, W_in - 1).astype(jnp.int32)
        yi_c = jnp.clip(yi, 0, H_in - 1).astype(jnp.int32)
        flat = yi_c * W_in + xi_c
        w = jnp.where(valid, w, 0.0)
        oh = jax.nn.one_hot(flat, H_in * W_in, dtype=jnp.float32)
        return oh * w[:, None]

    return (contrib(ix0, iy0, wx0 * wy0) + contrib(ix1, iy0, wx1 * wy0)
            + contrib(ix0, iy1, wx0 * wy1) + contrib(ix1, iy1, wx1 * wy1))


def make_tap_masks(H, W):
    """(9, HW) 0/1 validity masks for the 3x3 taps (batch-invariant, hoisted)."""
    idx = jnp.arange(H * W)
    hh = idx // W
    ww = idx % W
    rows = []
    for dh in (-1, 0, 1):
        for dw in (-1, 0, 1):
            valid = ((hh + dh >= 0) & (hh + dh <= H - 1)
                     & (ww + dw >= 0) & (ww + dw <= W - 1))
            rows.append(valid.astype(jnp.float32))
    return jnp.stack(rows, axis=0)


def pack_conv_weight(w, c_pad):
    """(F, C, 3, 3) -> (F, 9*c_pad) bf16, row order (dh, dw, c), zero-padded
    channels so taps stack on sublane-aligned (8,*) boundaries."""
    F, C, _, _ = w.shape
    wt = jnp.transpose(w, (0, 2, 3, 1))                        # (F, 3, 3, C)
    wt = jnp.pad(wt, ((0, 0), (0, 0), (0, 0), (0, c_pad - C)))
    return wt.reshape(F, 9 * c_pad).astype(jnp.bfloat16)


# ----------------------------------------------------------------------------
# Parameters / forward wrapper
# ----------------------------------------------------------------------------

def init_params(key):
    # TODO(synk): the two ResNet-101 backbones are replaced by a deterministic
    # 3x3-conv + ReLU + global-average-pool feature extractor each (same role:
    # image -> num_features / image -> classifier features).
    ks = jax.random.split(key, 8)
    F, C, NC = NUM_FEATURES, CHANNELS, NUM_CLASSES
    H = W = IMAGE_SIZE
    p = {}
    w_where = 0.1 * jax.random.normal(ks[0], (F, C, 3, 3), jnp.float32)
    w_cls = 0.1 * jax.random.normal(ks[4], (F, C, 3, 3), jnp.float32)
    p['conv_where_w'] = pack_conv_weight(w_where, C_PAD)          # bf16
    p['conv_where_b'] = 0.1 * jax.random.normal(ks[1], (F,), jnp.float32)
    # mu Linear(num_features, 2); weights/bias divided by sqrt(num_features) as in __init__
    p['mu_w'] = (jax.random.uniform(ks[2], (2, F), jnp.float32, -1.0, 1.0)
                 / jnp.sqrt(float(F)) / jnp.sqrt(float(F))).astype(jnp.bfloat16)
    p['mu_b'] = (jax.random.uniform(ks[3], (2,), jnp.float32, -1.0, 1.0)
                 / jnp.sqrt(float(F)) / jnp.sqrt(float(F)))
    p['conv_cls_w'] = pack_conv_weight(w_cls, C_PAD)              # bf16
    p['conv_cls_b'] = 0.1 * jax.random.normal(ks[5], (F,), jnp.float32)
    p['fc_w'] = (0.1 * jax.random.normal(ks[6], (NC, F), jnp.float32)).astype(jnp.bfloat16)
    p['fc_b'] = 0.1 * jax.random.normal(ks[7], (NC,), jnp.float32)
    p['downscale'] = jnp.array([[DOWNSCALE, 0.0], [0.0, DOWNSCALE]], jnp.float32)
    p['label_filter'] = jnp.zeros((NC,), jnp.float32)   # zeros, as in the reference script
    p['tap_masks'] = make_tap_masks(H, W)               # (9, HW), hoisted constants
    # Log-polar "what" grid is input/batch-invariant: build its bilinear
    # sampling matrix once at init; store transposed and in bf16.
    what_grid = log_polar_grid(0, -5, H, W)
    p['s_what_T'] = build_sample_matrix(what_grid, H, W).T.astype(jnp.bfloat16)
    return p


def forward(params, x):
    """Grid_AttentionTransNet.forward (do_stn=True, deterministic=True)."""
    B, C, H, W = x.shape
    F, NC = NUM_FEATURES, NUM_CLASSES
    x_flat = x.reshape(B, C, H * W)
    x_pad = jnp.pad(x_flat, ((0, 0), (0, C_PAD - C), (0, 0)))     # zero channels

    packed = fused_forward(
        x_pad, params['tap_masks'],
        params['conv_where_w'], params['conv_where_b'].reshape(F, 1),
        params['mu_w'], params['mu_b'].reshape(2, 1),
        params['downscale'],
        params['s_what_T'],
        params['conv_cls_w'], params['conv_cls_b'].reshape(F, 1),
        params['fc_w'], params['fc_b'].reshape(NC, 1),
        params['label_filter'].reshape(NC, 1),
    )
    z = packed[:, 0, 0:2]                    # (B, 2); deterministic branch: z = mu
    y = packed[:, 0, 2:2 + NC]               # (B, NC); identically zero (label_filter)
    # theta = [downscale | z], rebuilt outside the kernel (pure layout)
    theta = jnp.concatenate(
        [jnp.broadcast_to(params['downscale'][None], (B, 2, 2)), z[:, :, None]],
        axis=2)                              # (B, 2, 3)
    # TODO(synk): torch.distributions.Normal(mu, sigma) bookkeeping and the
    # debug prints have no effect on the forward outputs and are omitted.
    return y, theta, z


if __name__ == "__main__":
    key = jax.random.PRNGKey(0)
    kx, kp = jax.random.split(key)
    x = jax.random.normal(kx, (BATCH, CHANNELS, IMAGE_SIZE, IMAGE_SIZE), dtype=jnp.float32)
    params = init_params(kp)

    fwd = jax.jit(forward)
    y, theta, z = fwd(params, x)
    jax.block_until_ready((y, theta, z))

    assert y.shape == (BATCH, NUM_CLASSES)
    assert theta.shape == (BATCH, 2, 3)
    assert z.shape == (BATCH, 2)
    print("KERNEL_OK")
</pallas_src>

<mosaic_0001>
module attributes {stable_mosaic.version = 11 : i64} {
  func.func @kernel(%arg0: i32, %arg1: memref<1x8x256xf32, #tpu.memory_space<vmem>>, %arg2: memref<9x256xf32, #tpu.memory_space<vmem>>, %arg3: memref<32x72xbf16, #tpu.memory_space<vmem>>, %arg4: memref<32x1xf32, #tpu.memory_space<vmem>>, %arg5: memref<2x32xbf16, #tpu.memory_space<vmem>>, %arg6: memref<2x1xf32, #tpu.memory_space<vmem>>, %arg7: memref<2x2xf32, #tpu.memory_space<vmem>>, %arg8: memref<256x256xbf16, #tpu.memory_space<vmem>>, %arg9: memref<32x72xbf16, #tpu.memory_space<vmem>>, %arg10: memref<32x1xf32, #tpu.memory_space<vmem>>, %arg11: memref<16x32xbf16, #tpu.memory_space<vmem>>, %arg12: memref<16x1xf32, #tpu.memory_space<vmem>>, %arg13: memref<16x1xf32, #tpu.memory_space<vmem>>, %arg14: memref<1x1x128xf32, #tpu.memory_space<vmem>>) attributes {dimension_semantics = [#tpu.dimension_semantics<parallel>], iteration_bounds = array<i64: 2>, scalar_prefetch = 0 : i64, scratch_operands = 0 : i64, tpu.core_type = #tpu.core_type<tc>, window_params = [{transform_indices = @transform_0, window_bounds = array<i64: 1, 8, 256>}, {pipeline_mode = #tpu.pipeline_mode<synchronous>, transform_indices = @transform_1, window_bounds = array<i64: 9, 256>}, {pipeline_mode = #tpu.pipeline_mode<synchronous>, transform_indices = @transform_2, window_bounds = array<i64: 32, 72>}, {pipeline_mode = #tpu.pipeline_mode<synchronous>, transform_indices = @transform_3, window_bounds = array<i64: 32, 1>}, {pipeline_mode = #tpu.pipeline_mode<synchronous>, transform_indices = @transform_4, window_bounds = array<i64: 2, 32>}, {pipeline_mode = #tpu.pipeline_mode<synchronous>, transform_indices = @transform_5, window_bounds = array<i64: 2, 1>}, {pipeline_mode = #tpu.pipeline_mode<synchronous>, transform_indices = @transform_6, window_bounds = array<i64: 2, 2>}, {pipeline_mode = #tpu.pipeline_mode<synchronous>, transform_indices = @transform_7, window_bounds = array<i64: 256, 256>}, {pipeline_mode = #tpu.pipeline_mode<synchronous>, transform_indices = @transform_8, window_bounds = array<i64: 32, 72>}, {pipeline_mode = #tpu.pipeline_mode<synchronous>, transform_indices = @transform_9, window_bounds = array<i64: 32, 1>}, {pipeline_mode = #tpu.pipeline_mode<synchronous>, transform_indices = @transform_10, window_bounds = array<i64: 16, 32>}, {pipeline_mode = #tpu.pipeline_mode<synchronous>, transform_indices = @transform_11, window_bounds = array<i64: 16, 1>}, {pipeline_mode = #tpu.pipeline_mode<synchronous>, transform_indices = @transform_12, window_bounds = array<i64: 16, 1>}, {transform_indices = @transform_13, window_bounds = array<i64: 1, 1, 128>}]} {
    %c0 = arith.constant 0 : index
    %c0_0 = arith.constant 0 : index
    %c0_1 = arith.constant 0 : index
    %0 = vector.load %arg1[%c0, %c0_0, %c0_1] : memref<1x8x256xf32, #tpu.memory_space<vmem>>, vector<1x8x256xf32>
    %1 = vector.shape_cast %0 : vector<1x8x256xf32> to vector<8x256xf32>
    %c17_i32 = arith.constant 17 : i32
    %2 = tpu.dynamic_rotate %1 by %c17_i32 dim 1 : vector<8x256xf32>, i32 -> vector<8x256xf32>
    %c0_2 = arith.constant 0 : index
    %c0_3 = arith.constant 0 : index
    %3 = vector.load %arg2[%c0_2, %c0_3] : memref<9x256xf32, #tpu.memory_space<vmem>>, vector<1x256xf32>
    %4 = vector.broadcast %3 : vector<1x256xf32> to vector<8x256xf32>
    %5 = arith.mulf %2, %4 : vector<8x256xf32>
    %c16_i32 = arith.constant 16 : i32
    %6 = tpu.dynamic_rotate %1 by %c16_i32 dim 1 : vector<8x256xf32>, i32 -> vector<8x256xf32>
    %c1 = arith.constant 1 : index
    %c0_4 = arith.constant 0 : index
    %7 = vector.load %arg2[%c1, %c0_4] : memref<9x256xf32, #tpu.memory_space<vmem>>, vector<1x256xf32>
    %8 = vector.broadcast %7 : vector<1x256xf32> to vector<8x256xf32>
    %9 = arith.mulf %6, %8 : vector<8x256xf32>
    %c15_i32 = arith.constant 15 : i32
    %10 = tpu.dynamic_rotate %1 by %c15_i32 dim 1 : vector<8x256xf32>, i32 -> vector<8x256xf32>
    %c2 = arith.constant 2 : index
    %c0_5 = arith.constant 0 : index
    %11 = vector.load %arg2[%c2, %c0_5] : memref<9x256xf32, #tpu.memory_space<vmem>>, vector<1x256xf32>
    %12 = vector.broadcast %11 : vector<1x256xf32> to vector<8x256xf32>
    %13 = arith.mulf %10, %12 : vector<8x256xf32>
    %c1_i32 = arith.constant 1 : i32
    %14 = tpu.dynamic_rotate %1 by %c1_i32 dim 1 : vector<8x256xf32>, i32 -> vector<8x256xf32>
    %c3 = arith.constant 3 : index
    %c0_6 = arith.constant 0 : index
    %15 = vector.load %arg2[%c3, %c0_6] : memref<9x256xf32, #tpu.memory_space<vmem>>, vector<1x256xf32>
    %16 = vector.broadcast %15 : vector<1x256xf32> to vector<8x256xf32>
    %17 = arith.mulf %14, %16 : vector<8x256xf32>
    %c4 = arith.constant 4 : index
    %c0_7 = arith.constant 0 : index
    %18 = vector.load %arg2[%c4, %c0_7] : memref<9x256xf32, #tpu.memory_space<vmem>>, vector<1x256xf32>
    %19 = vector.broadcast %18 : vector<1x256xf32> to vector<8x256xf32>
    %20 = arith.mulf %1, %19 : vector<8x256xf32>
    %c255_i32 = arith.constant 255 : i32
    %21 = tpu.dynamic_rotate %1 by %c255_i32 dim 1 : vector<8x256xf32>, i32 -> vector<8x256xf32>
    %c5 = arith.constant 5 : index
    %c0_8 = arith.constant 0 : index
    %22 = vector.load %arg2[%c5, %c0_8] : memref<9x256xf32, #tpu.memory_space<vmem>>, vector<1x256xf32>
    %23 = vector.broadcast %22 : vector<1x256xf32> to vector<8x256xf32>
    %24 = arith.mulf %21, %23 : vector<8x256xf32>
    %c241_i32 = arith.constant 241 : i32
    %25 = tpu.dynamic_rotate %1 by %c241_i32 dim 1 : vector<8x256xf32>, i32 -> vector<8x256xf32>
    %c6 = arith.constant 6 : index
    %c0_9 = arith.constant 0 : index
    %26 = vector.load %arg2[%c6, %c0_9] : memref<9x256xf32, #tpu.memory_space<vmem>>, vector<1x256xf32>
    %27 = vector.broadcast %26 : vector<1x256xf32> to vector<8x256xf32>
    %28 = arith.mulf %25, %27 : vector<8x256xf32>
    %c240_i32 = arith.constant 240 : i32
    %29 = tpu.dynamic_rotate %1 by %c240_i32 dim 1 : vector<8x256xf32>, i32 -> vector<8x256xf32>
    %c7 = arith.constant 7 : index
    %c0_10 = arith.constant 0 : index
    %30 = vector.load %arg2[%c7, %c0_10] : memref<9x256xf32, #tpu.memory_space<vmem>>, vector<1x256xf32>
    %31 = vector.broadcast %30 : vector<1x256xf32> to vector<8x256xf32>
    %32 = arith.mulf %29, %31 : vector<8x256xf32>
    %c239_i32 = arith.constant 239 : i32
    %33 = tpu.dynamic_rotate %1 by %c239_i32 dim 1 : vector<8x256xf32>, i32 -> vector<8x256xf32>
    %c8 = arith.constant 8 : index
    %c0_11 = arith.constant 0 : index
    %34 = vector.load %arg2[%c8, %c0_11] : memref<9x256xf32, #tpu.memory_space<vmem>>, vector<1x256xf32>
    %35 = vector.broadcast %34 : vector<1x256xf32> to vector<8x256xf32>
    %36 = arith.mulf %33, %35 : vector<8x256xf32>
    %37 = tpu.concatenate %5, %9, %13, %17, %20, %24, %28, %32, %36 in 0 : vector<8x256xf32>, vector<8x256xf32>, vector<8x256xf32>, vector<8x256xf32>, vector<8x256xf32>, vector<8x256xf32>, vector<8x256xf32>, vector<8x256xf32>, vector<8x256xf32> -> vector<72x256xf32>
    %38 = arith.truncf %37 : vector<72x256xf32> to vector<72x256xbf16>
    %c0_12 = arith.constant 0 : index
    %c0_13 = arith.constant 0 : index
    %39 = vector.load %arg3[%c0_12, %c0_13] : memref<32x72xbf16, #tpu.memory_space<vmem>>, vector<32x72xbf16>
    %cst = arith.constant dense<0.000000e+00> : vector<32x256xf32>
    %40 = tpu.matmul %39, %38, %cst {dimension_numbers = #tpu.dot_dimension_numbers<[1], [0], [0], [1], [0, 0, 1, 1], [], []>} : vector<32x72xbf16>, vector<72x256xbf16>, vector<32x256xf32> -> vector<32x256xf32>
    %c0_14 = arith.constant 0 : index
    %c0_15 = arith.constant 0 : index
    %41 = vector.load %arg4[%c0_14, %c0_15] : memref<32x1xf32, #tpu.memory_space<vmem>>, vector<32x1xf32>
    %42 = vector.broadcast %41 : vector<32x1xf32> to vector<32x256xf32>
    %43 = arith.addf %40, %42 : vector<32x256xf32>
    %cst_16 = arith.constant 0.000000e+00 : f32
    %44 = vector.broadcast %cst_16 : f32 to vector<32x256xf32>
    %45 = arith.maximumf %43, %44 : vector<32x256xf32>
    %c0_17 = arith.constant 0 : index
    %c0_18 = arith.constant 0 : index
    %46 = vector.load %arg5[%c0_17, %c0_18] : memref<2x32xbf16, #tpu.memory_space<vmem>>, vector<2x32xbf16>
    %47 = arith.truncf %45 : vector<32x256xf32> to vector<32x256xbf16>
    %cst_19 = arith.constant dense<0.000000e+00> : vector<2x256xf32>
    %48 = tpu.matmul %46, %47, %cst_19 {dimension_numbers = #tpu.dot_dimension_numbers<[1], [0], [0], [1], [0, 0, 1, 1], [], []>} : vector<2x32xbf16>, vector<32x256xbf16>, vector<2x256xf32> -> vector<2x256xf32>
    %cst_20 = arith.constant dense<0.000000e+00> : vector<2xf32>
    %49 = vector.multi_reduction <add>, %48, %cst_20 [1] : vector<2x256xf32> to vector<2xf32>
    %50 = vector.shape_cast %49 : vector<2xf32> to vector<2x1xf32>
    %cst_21 = arith.constant 2.560000e+02 : f32
    %51 = vector.broadcast %cst_21 : f32 to vector<2x1xf32>
    %52 = arith.divf %50, %51 : vector<2x1xf32>
    %c0_22 = arith.constant 0 : index
    %c0_23 = arith.constant 0 : index
    %53 = vector.load %arg6[%c0_22, %c0_23] : memref<2x1xf32, #tpu.memory_space<vmem>>, vector<2x1xf32>
    %54 = arith.addf %52, %53 : vector<2x1xf32>
    %55 = vector.extract_strided_slice %54 {offsets = [0, 0], sizes = [1, 1], strides = [1, 1]} : vector<2x1xf32> to vector<1x1xf32>
    %56 = vector.extract_strided_slice %54 {offsets = [1, 0], sizes = [1, 1], strides = [1, 1]} : vector<2x1xf32> to vector<1x1xf32>
    %c1_24 = arith.constant 1 : index
    %c1_25 = arith.constant 1 : index
    %57 = vector.load %arg7[%c1_24, %c1_25] : memref<2x2xf32, #tpu.memory_space<vmem>>, vector<1x1xf32>
    %58 = tpu.iota {dimensions = array<i32: 0>} : vector<16x1xi32>
    %59 = arith.sitofp %58 : vector<16x1xi32> to vector<16x1xf32>
    %cst_26 = arith.constant 2.000000e+00 : f32
    %60 = vector.broadcast %cst_26 : f32 to vector<16x1xf32>
    %61 = arith.mulf %60, %59 : vector<16x1xf32>
    %cst_27 = arith.constant 1.000000e+00 : f32
    %62 = vector.broadcast %cst_27 : f32 to vector<16x1xf32>
    %63 = arith.addf %61, %62 : vector<16x1xf32>
    %cst_28 = arith.constant 1.600000e+01 : f32
    %64 = vector.broadcast %cst_28 : f32 to vector<16x1xf32>
    %65 = arith.divf %63, %64 : vector<16x1xf32>
    %cst_29 = arith.constant 1.000000e+00 : f32
    %66 = vector.broadcast %cst_29 : f32 to vector<16x1xf32>
    %67 = arith.subf %65, %66 : vector<16x1xf32>
    %68 = vector.broadcast %57 : vector<1x1xf32> to vector<16x1xf32>
    %69 = arith.mulf %68, %67 : vector<16x1xf32>
    %70 = vector.broadcast %56 : vector<1x1xf32> to vector<16x1xf32>
    %71 = arith.addf %69, %70 : vector<16x1xf32>
    %cst_30 = arith.constant 1.000000e+00 : f32
    %72 = vector.broadcast %cst_30 : f32 to vector<16x1xf32>
    %73 = arith.addf %71, %72 : vector<16x1xf32>
    %cst_31 = arith.constant 1.600000e+01 : f32
    %74 = vector.broadcast %cst_31 : f32 to vector<16x1xf32>
    %75 = arith.mulf %73, %74 : vector<16x1xf32>
    %cst_32 = arith.constant 1.000000e+00 : f32
    %76 = vector.broadcast %cst_32 : f32 to vector<16x1xf32>
    %77 = arith.subf %75, %76 : vector<16x1xf32>
    %cst_33 = arith.constant 5.000000e-01 : f32
    %78 = vector.broadcast %cst_33 : f32 to vector<16x1xf32>
    %79 = arith.mulf %77, %78 : vector<16x1xf32>
    %80 = math.floor %79 : vector<16x1xf32>
    %cst_34 = arith.constant 1.000000e+00 : f32
    %81 = vector.broadcast %cst_34 : f32 to vector<16x1xf32>
    %82 = arith.addf %80, %81 : vector<16x1xf32>
    %83 = arith.subf %79, %80 : vector<16x1xf32>
    %cst_35 = arith.constant 1.000000e+00 : f32
    %84 = vector.broadcast %cst_35 : f32 to vector<16x1xf32>
    %85 = arith.subf %84, %83 : vector<16x1xf32>
    %86 = tpu.iota {dimensions = array<i32: 1>} : vector<16x16xi32>
    %cst_36 = arith.constant 0.000000e+00 : f32
    %87 = vector.broadcast %cst_36 : f32 to vector<16x1xf32>
    %88 = arith.cmpf oge, %80, %87 : vector<16x1xf32>
    %cst_37 = arith.constant 1.500000e+01 : f32
    %89 = vector.broadcast %cst_37 : f32 to vector<16x1xf32>
    %90 = arith.cmpf ole, %80, %89 : vector<16x1xf32>
    %91 = arith.andi %88, %90 : vector<16x1xi1>
    %cst_38 = arith.constant 0.000000e+00 : f32
    %cst_39 = arith.constant 1.500000e+01 : f32
    %92 = vector.broadcast %cst_38 : f32 to vector<16x1xf32>
    %93 = arith.maximumf %92, %80 : vector<16x1xf32>
    %94 = vector.broadcast %cst_39 : f32 to vector<16x1xf32>
    %95 = arith.minimumf %94, %93 : vector<16x1xf32>
    %96 = arith.fptosi %95 : vector<16x1xf32> to vector<16x1xi32>
    %cst_40 = arith.constant 0.000000e+00 : f32
    %97 = vector.broadcast %cst_40 : f32 to vector<16x1xf32>
    %98 = arith.select %91, %85, %97 : vector<16x1xi1>, vector<16x1xf32>
    %99 = vector.broadcast %96 : vector<16x1xi32> to vector<16x16xi32>
    %100 = arith.cmpi eq, %86, %99 : vector<16x16xi32>
    %cst_41 = arith.constant 0.000000e+00 : f32
    %101 = vector.shape_cast %98 : vector<16x1xf32> to vector<16x1xf32>
    %102 = vector.broadcast %101 : vector<16x1xf32> to vector<16x16xf32>
    %103 = vector.broadcast %cst_41 : f32 to vector<16x16xf32>
    %104 = arith.select %100, %102, %103 : vector<16x16xi1>, vector<16x16xf32>
    %cst_42 = arith.constant 0.000000e+00 : f32
    %105 = vector.broadcast %cst_42 : f32 to vector<16x1xf32>
    %106 = arith.cmpf oge, %82, %105 : vector<16x1xf32>
    %cst_43 = arith.constant 1.500000e+01 : f32
    %107 = vector.broadcast %cst_43 : f32 to vector<16x1xf32>
    %108 = arith.cmpf ole, %82, %107 : vector<16x1xf32>
    %109 = arith.andi %106, %108 : vector<16x1xi1>
    %cst_44 = arith.constant 0.000000e+00 : f32
    %cst_45 = arith.constant 1.500000e+01 : f32
    %110 = vector.broadcast %cst_44 : f32 to vector<16x1xf32>
    %111 = arith.maximumf %110, %82 : vector<16x1xf32>
    %112 = vector.broadcast %cst_45 : f32 to vector<16x1xf32>
    %113 = arith.minimumf %112, %111 : vector<16x1xf32>
    %114 = arith.fptosi %113 : vector<16x1xf32> to vector<16x1xi32>
    %cst_46 = arith.constant 0.000000e+00 : f32
    %115 = vector.broadcast %cst_46 : f32 to vector<16x1xf32>
    %116 = arith.select %109, %83, %115 : vector<16x1xi1>, vector<16x1xf32>
    %117 = vector.broadcast %114 : vector<16x1xi32> to vector<16x16xi32>
    %118 = arith.cmpi eq, %86, %117 : vector<16x16xi32>
    %cst_47 = arith.constant 0.000000e+00 : f32
    %119 = vector.shape_cast %116 : vector<16x1xf32> to vector<16x1xf32>
    %120 = vector.broadcast %119 : vector<16x1xf32> to vector<16x16xf32>
    %121 = vector.broadcast %cst_47 : f32 to vector<16x16xf32>
    %122 = arith.select %118, %120, %121 : vector<16x16xi1>, vector<16x16xf32>
    %123 = arith.addf %104, %122 : vector<16x16xf32>
    %124 = arith.truncf %123 : vector<16x16xf32> to vector<16x16xbf16>
    %c0_48 = arith.constant 0 : index
    %c0_49 = arith.constant 0 : index
    %125 = vector.load %arg7[%c0_48, %c0_49] : memref<2x2xf32, #tpu.memory_space<vmem>>, vector<1x1xf32>
    %126 = tpu.iota {dimensions = array<i32: 1>} : vector<1x16xi32>
    %127 = arith.sitofp %126 : vector<1x16xi32> to vector<1x16xf32>
    %cst_50 = arith.constant 2.000000e+00 : f32
    %128 = vector.broadcast %cst_50 : f32 to vector<1x16xf32>
    %129 = arith.mulf %128, %127 : vector<1x16xf32>
    %cst_51 = arith.constant 1.000000e+00 : f32
    %130 = vector.broadcast %cst_51 : f32 to vector<1x16xf32>
    %131 = arith.addf %129, %130 : vector<1x16xf32>
    %cst_52 = arith.constant 1.600000e+01 : f32
    %132 = vector.broadcast %cst_52 : f32 to vector<1x16xf32>
    %133 = arith.divf %131, %132 : vector<1x16xf32>
    %cst_53 = arith.constant 1.000000e+00 : f32
    %134 = vector.broadcast %cst_53 : f32 to vector<1x16xf32>
    %135 = arith.subf %133, %134 : vector<1x16xf32>
    %136 = vector.broadcast %125 : vector<1x1xf32> to vector<1x16xf32>
    %137 = arith.mulf %136, %135 : vector<1x16xf32>
    %138 = vector.broadcast %55 : vector<1x1xf32> to vector<1x16xf32>
    %139 = arith.addf %137, %138 : vector<1x16xf32>
    %cst_54 = arith.constant 1.000000e+00 : f32
    %140 = vector.broadcast %cst_54 : f32 to vector<1x16xf32>
    %141 = arith.addf %139, %140 : vector<1x16xf32>
    %cst_55 = arith.constant 1.600000e+01 : f32
    %142 = vector.broadcast %cst_55 : f32 to vector<1x16xf32>
    %143 = arith.mulf %141, %142 : vector<1x16xf32>
    %cst_56 = arith.constant 1.000000e+00 : f32
    %144 = vector.broadcast %cst_56 : f32 to vector<1x16xf32>
    %145 = arith.subf %143, %144 : vector<1x16xf32>
    %cst_57 = arith.constant 5.000000e-01 : f32
    %146 = vector.broadcast %cst_57 : f32 to vector<1x16xf32>
    %147 = arith.mulf %145, %146 : vector<1x16xf32>
    %148 = math.floor %147 : vector<1x16xf32>
    %cst_58 = arith.constant 1.000000e+00 : f32
    %149 = vector.broadcast %cst_58 : f32 to vector<1x16xf32>
    %150 = arith.addf %148, %149 : vector<1x16xf32>
    %151 = arith.subf %147, %148 : vector<1x16xf32>
    %cst_59 = arith.constant 1.000000e+00 : f32
    %152 = vector.broadcast %cst_59 : f32 to vector<1x16xf32>
    %153 = arith.subf %152, %151 : vector<1x16xf32>
    %154 = tpu.iota {dimensions = array<i32: 0>} : vector<16x16xi32>
    %cst_60 = arith.constant 0.000000e+00 : f32
    %155 = vector.broadcast %cst_60 : f32 to vector<1x16xf32>
    %156 = arith.cmpf oge, %148, %155 : vector<1x16xf32>
    %cst_61 = arith.constant 1.500000e+01 : f32
    %157 = vector.broadcast %cst_61 : f32 to vector<1x16xf32>
    %158 = arith.cmpf ole, %148, %157 : vector<1x16xf32>
    %159 = arith.andi %156, %158 : vector<1x16xi1>
    %cst_62 = arith.constant 0.000000e+00 : f32
    %cst_63 = arith.constant 1.500000e+01 : f32
    %160 = vector.broadcast %cst_62 : f32 to vector<1x16xf32>
    %161 = arith.maximumf %160, %148 : vector<1x16xf32>
    %162 = vector.broadcast %cst_63 : f32 to vector<1x16xf32>
    %163 = arith.minimumf %162, %161 : vector<1x16xf32>
    %164 = arith.fptosi %163 : vector<1x16xf32> to vector<1x16xi32>
    %cst_64 = arith.constant 0.000000e+00 : f32
    %165 = vector.broadcast %cst_64 : f32 to vector<1x16xf32>
    %166 = arith.select %159, %153, %165 : vector<1x16xi1>, vector<1x16xf32>
    %167 = vector.broadcast %164 : vector<1x16xi32> to vector<16x16xi32>
    %168 = arith.cmpi eq, %154, %167 : vector<16x16xi32>
    %cst_65 = arith.constant 0.000000e+00 : f32
    %169 = vector.shape_cast %166 : vector<1x16xf32> to vector<1x16xf32>
    %170 = vector.broadcast %169 : vector<1x16xf32> to vector<16x16xf32>
    %171 = vector.broadcast %cst_65 : f32 to vector<16x16xf32>
    %172 = arith.select %168, %170, %171 : vector<16x16xi1>, vector<16x16xf32>
    %cst_66 = arith.constant 0.000000e+00 : f32
    %173 = vector.broadcast %cst_66 : f32 to vector<1x16xf32>
    %174 = arith.cmpf oge, %150, %173 : vector<1x16xf32>
    %cst_67 = arith.constant 1.500000e+01 : f32
    %175 = vector.broadcast %cst_67 : f32 to vector<1x16xf32>
    %176 = arith.cmpf ole, %150, %175 : vector<1x16xf32>
    %177 = arith.andi %174, %176 : vector<1x16xi1>
    %cst_68 = arith.constant 0.000000e+00 : f32
    %cst_69 = arith.constant 1.500000e+01 : f32
    %178 = vector.broadcast %cst_68 : f32 to vector<1x16xf32>
    %179 = arith.maximumf %178, %150 : vector<1x16xf32>
    %180 = vector.broadcast %cst_69 : f32 to vector<1x16xf32>
    %181 = arith.minimumf %180, %179 : vector<1x16xf32>
    %182 = arith.fptosi %181 : vector<1x16xf32> to vector<1x16xi32>
    %cst_70 = arith.constant 0.000000e+00 : f32
    %183 = vector.broadcast %cst_70 : f32 to vector<1x16xf32>
    %184 = arith.select %177, %151, %183 : vector<1x16xi1>, vector<1x16xf32>
    %185 = vector.broadcast %182 : vector<1x16xi32> to vector<16x16xi32>
    %186 = arith.cmpi eq, %154, %185 : vector<16x16xi32>
    %cst_71 = arith.constant 0.000000e+00 : f32
    %187 = vector.shape_cast %184 : vector<1x16xf32> to vector<1x16xf32>
    %188 = vector.broadcast %187 : vector<1x16xf32> to vector<16x16xf32>
    %189 = vector.broadcast %cst_71 : f32 to vector<16x16xf32>
    %190 = arith.select %186, %188, %189 : vector<16x16xi1>, vector<16x16xf32>
    %191 = arith.addf %172, %190 : vector<16x16xf32>
    %192 = arith.truncf %191 : vector<16x16xf32> to vector<16x16xbf16>
    %193 = vector.shape_cast %1 : vector<8x256xf32> to vector<8x16x16xf32>
    %194 = arith.truncf %193 : vector<8x16x16xf32> to vector<8x16x16xbf16>
    %195 = vector.shape_cast %124 : vector<16x16xbf16> to vector<1x16x16xbf16>
    %196 = vector.shape_cast %195 : vector<1x16x16xbf16> to vector<1x16x16xbf16>
    %197 = vector.broadcast %196 : vector<1x16x16xbf16> to vector<8x16x16xbf16>
    %198 = vector.shape_cast %192 : vector<16x16xbf16> to vector<1x16x16xbf16>
    %199 = vector.shape_cast %198 : vector<1x16x16xbf16> to vector<1x16x16xbf16>
    %200 = vector.broadcast %199 : vector<1x16x16xbf16> to vector<8x16x16xbf16>
    "tpu.trace_start"() <{level = 10 : i32, message = "bhk,bkw->bhw"}> : () -> ()
    %cst_72 = arith.constant dense<0.000000e+00> : vector<8x16x16xf32>
    %201 = tpu.matmul %197, %194, %cst_72 {dimension_numbers = #tpu.dot_dimension_numbers<[2], [1], [1], [2], [0, 0, 0, 1, 1, 2], [0], [0]>} : vector<8x16x16xbf16>, vector<8x16x16xbf16>, vector<8x16x16xf32> -> vector<8x16x16xf32>
    "tpu.trace_stop"() : () -> ()
    %202 = arith.truncf %201 : vector<8x16x16xf32> to vector<8x16x16xbf16>
    "tpu.trace_start"() <{level = 10 : i32, message = "bhk,bkw->bhw"}> : () -> ()
    %cst_73 = arith.constant dense<0.000000e+00> : vector<8x16x16xf32>
    %203 = tpu.matmul %202, %200, %cst_73 {dimension_numbers = #tpu.dot_dimension_numbers<[2], [1], [1], [2], [0, 0, 0, 1, 1, 2], [0], [0]>} : vector<8x16x16xbf16>, vector<8x16x16xbf16>, vector<8x16x16xf32> -> vector<8x16x16xf32>
    "tpu.trace_stop"() : () -> ()
    %204 = vector.shape_cast %203 : vector<8x16x16xf32> to vector<8x256xf32>
    %205 = arith.truncf %204 : vector<8x256xf32> to vector<8x256xbf16>
    %c0_74 = arith.constant 0 : index
    %c0_75 = arith.constant 0 : index
    %206 = vector.load %arg8[%c0_74, %c0_75] : memref<256x256xbf16, #tpu.memory_space<vmem>>, vector<256x256xbf16>
    %cst_76 = arith.constant dense<0.000000e+00> : vector<8x256xf32>
    %207 = tpu.matmul %205, %206, %cst_76 {dimension_numbers = #tpu.dot_dimension_numbers<[1], [0], [0], [1], [0, 0, 1, 1], [], []>} : vector<8x256xbf16>, vector<256x256xbf16>, vector<8x256xf32> -> vector<8x256xf32>
    %c17_i32_77 = arith.constant 17 : i32
    %208 = tpu.dynamic_rotate %207 by %c17_i32_77 dim 1 : vector<8x256xf32>, i32 -> vector<8x256xf32>
    %c0_78 = arith.constant 0 : index
    %c0_79 = arith.constant 0 : index
    %209 = vector.load %arg2[%c0_78, %c0_79] : memref<9x256xf32, #tpu.memory_space<vmem>>, vector<1x256xf32>
    %210 = vector.broadcast %209 : vector<1x256xf32> to vector<8x256xf32>
    %211 = arith.mulf %208, %210 : vector<8x256xf32>
    %c16_i32_80 = arith.constant 16 : i32
    %212 = tpu.dynamic_rotate %207 by %c16_i32_80 dim 1 : vector<8x256xf32>, i32 -> vector<8x256xf32>
    %c1_81 = arith.constant 1 : index
    %c0_82 = arith.constant 0 : index
    %213 = vector.load %arg2[%c1_81, %c0_82] : memref<9x256xf32, #tpu.memory_space<vmem>>, vector<1x256xf32>
    %214 = vector.broadcast %213 : vector<1x256xf32> to vector<8x256xf32>
    %215 = arith.mulf %212, %214 : vector<8x256xf32>
    %c15_i32_83 = arith.constant 15 : i32
    %216 = tpu.dynamic_rotate %207 by %c15_i32_83 dim 1 : vector<8x256xf32>, i32 -> vector<8x256xf32>
    %c2_84 = arith.constant 2 : index
    %c0_85 = arith.constant 0 : index
    %217 = vector.load %arg2[%c2_84, %c0_85] : memref<9x256xf32, #tpu.memory_space<vmem>>, vector<1x256xf32>
    %218 = vector.broadcast %217 : vector<1x256xf32> to vector<8x256xf32>
    %219 = arith.mulf %216, %218 : vector<8x256xf32>
    %c1_i32_86 = arith.constant 1 : i32
    %220 = tpu.dynamic_rotate %207 by %c1_i32_86 dim 1 : vector<8x256xf32>, i32 -> vector<8x256xf32>
    %c3_87 = arith.constant 3 : index
    %c0_88 = arith.constant 0 : index
    %221 = vector.load %arg2[%c3_87, %c0_88] : memref<9x256xf32, #tpu.memory_space<vmem>>, vector<1x256xf32>
    %222 = vector.broadcast %221 : vector<1x256xf32> to vector<8x256xf32>
    %223 = arith.mulf %220, %222 : vector<8x256xf32>
    %c4_89 = arith.constant 4 : index
    %c0_90 = arith.constant 0 : index
    %224 = vector.load %arg2[%c4_89, %c0_90] : memref<9x256xf32, #tpu.memory_space<vmem>>, vector<1x256xf32>
    %225 = vector.broadcast %224 : vector<1x256xf32> to vector<8x256xf32>
    %226 = arith.mulf %207, %225 : vector<8x256xf32>
    %c255_i32_91 = arith.constant 255 : i32
    %227 = tpu.dynamic_rotate %207 by %c255_i32_91 dim 1 : vector<8x256xf32>, i32 -> vector<8x256xf32>
    %c5_92 = arith.constant 5 : index
    %c0_93 = arith.constant 0 : index
    %228 = vector.load %arg2[%c5_92, %c0_93] : memref<9x256xf32, #tpu.memory_space<vmem>>, vector<1x256xf32>
    %229 = vector.broadcast %228 : vector<1x256xf32> to vector<8x256xf32>
    %230 = arith.mulf %227, %229 : vector<8x256xf32>
    %c241_i32_94 = arith.constant 241 : i32
    %231 = tpu.dynamic_rotate %207 by %c241_i32_94 dim 1 : vector<8x256xf32>, i32 -> vector<8x256xf32>
    %c6_95 = arith.constant 6 : index
    %c0_96 = arith.constant 0 : index
    %232 = vector.load %arg2[%c6_95, %c0_96] : memref<9x256xf32, #tpu.memory_space<vmem>>, vector<1x256xf32>
    %233 = vector.broadcast %232 : vector<1x256xf32> to vector<8x256xf32>
    %234 = arith.mulf %231, %233 : vector<8x256xf32>
    %c240_i32_97 = arith.constant 240 : i32
    %235 = tpu.dynamic_rotate %207 by %c240_i32_97 dim 1 : vector<8x256xf32>, i32 -> vector<8x256xf32>
    %c7_98 = arith.constant 7 : index
    %c0_99 = arith.constant 0 : index
    %236 = vector.load %arg2[%c7_98, %c0_99] : memref<9x256xf32, #tpu.memory_space<vmem>>, vector<1x256xf32>
    %237 = vector.broadcast %236 : vector<1x256xf32> to vector<8x256xf32>
    %238 = arith.mulf %235, %237 : vector<8x256xf32>
    %c239_i32_100 = arith.constant 239 : i32
    %239 = tpu.dynamic_rotate %207 by %c239_i32_100 dim 1 : vector<8x256xf32>, i32 -> vector<8x256xf32>
    %c8_101 = arith.constant 8 : index
    %c0_102 = arith.constant 0 : index
    %240 = vector.load %arg2[%c8_101, %c0_102] : memref<9x256xf32, #tpu.memory_space<vmem>>, vector<1x256xf32>
    %241 = vector.broadcast %240 : vector<1x256xf32> to vector<8x256xf32>
    %242 = arith.mulf %239, %241 : vector<8x256xf32>
    %243 = tpu.concatenate %211, %215, %219, %223, %226, %230, %234, %238, %242 in 0 : vector<8x256xf32>, vector<8x256xf32>, vector<8x256xf32>, vector<8x256xf32>, vector<8x256xf32>, vector<8x256xf32>, vector<8x256xf32>, vector<8x256xf32>, vector<8x256xf32> -> vector<72x256xf32>
    %244 = arith.truncf %243 : vector<72x256xf32> to vector<72x256xbf16>
    %c0_103 = arith.constant 0 : index
    %c0_104 = arith.constant 0 : index
    %245 = vector.load %arg9[%c0_103, %c0_104] : memref<32x72xbf16, #tpu.memory_space<vmem>>, vector<32x72xbf16>
    %cst_105 = arith.constant dense<0.000000e+00> : vector<32x256xf32>
    %246 = tpu.matmul %245, %244, %cst_105 {dimension_numbers = #tpu.dot_dimension_numbers<[1], [0], [0], [1], [0, 0, 1, 1], [], []>} : vector<32x72xbf16>, vector<72x256xbf16>, vector<32x256xf32> -> vector<32x256xf32>
    %c0_106 = arith.constant 0 : index
    %c0_107 = arith.constant 0 : index
    %247 = vector.load %arg10[%c0_106, %c0_107] : memref<32x1xf32, #tpu.memory_space<vmem>>, vector<32x1xf32>
    %248 = vector.broadcast %247 : vector<32x1xf32> to vector<32x256xf32>
    %249 = arith.addf %246, %248 : vector<32x256xf32>
    %cst_108 = arith.constant 0.000000e+00 : f32
    %250 = vector.broadcast %cst_108 : f32 to vector<32x256xf32>
    %251 = arith.maximumf %249, %250 : vector<32x256xf32>
    %c0_109 = arith.constant 0 : index
    %c0_110 = arith.constant 0 : index
    %252 = vector.load %arg11[%c0_109, %c0_110] : memref<16x32xbf16, #tpu.memory_space<vmem>>, vector<16x32xbf16>
    %253 = arith.truncf %251 : vector<32x256xf32> to vector<32x256xbf16>
    %cst_111 = arith.constant dense<0.000000e+00> : vector<16x256xf32>
    %254 = tpu.matmul %252, %253, %cst_111 {dimension_numbers = #tpu.dot_dimension_numbers<[1], [0], [0], [1], [0, 0, 1, 1], [], []>} : vector<16x32xbf16>, vector<32x256xbf16>, vector<16x256xf32> -> vector<16x256xf32>
    %cst_112 = arith.constant dense<0.000000e+00> : vector<16xf32>
    %255 = vector.multi_reduction <add>, %254, %cst_112 [1] : vector<16x256xf32> to vector<16xf32>
    %256 = vector.shape_cast %255 : vector<16xf32> to vector<16x1xf32>
    %cst_113 = arith.constant 2.560000e+02 : f32
    %257 = vector.broadcast %cst_113 : f32 to vector<16x1xf32>
    %258 = arith.divf %256, %257 : vector<16x1xf32>
    %c0_114 = arith.constant 0 : index
    %c0_115 = arith.constant 0 : index
    %259 = vector.load %arg12[%c0_114, %c0_115] : memref<16x1xf32, #tpu.memory_space<vmem>>, vector<16x1xf32>
    %260 = arith.addf %258, %259 : vector<16x1xf32>
    %c0_116 = arith.constant 0 : index
    %c0_117 = arith.constant 0 : index
    %261 = vector.load %arg13[%c0_116, %c0_117] : memref<16x1xf32, #tpu.memory_space<vmem>>, vector<16x1xf32>
    %262 = arith.mulf %260, %261 : vector<16x1xf32>
    %263 = tpu.concatenate %54, %262 in 0 : vector<2x1xf32>, vector<16x1xf32> -> vector<18x1xf32>
    %264 = tpu.iota {dimensions = array<i32: 0>} : vector<18x128xi32>
    %265 = tpu.iota {dimensions = array<i32: 1>} : vector<18x128xi32>
    %266 = arith.cmpi eq, %264, %265 : vector<18x128xi32>
    %cst_118 = arith.constant 0.000000e+00 : f32
    %267 = vector.shape_cast %263 : vector<18x1xf32> to vector<18x1xf32>
    %268 = vector.broadcast %267 : vector<18x1xf32> to vector<18x128xf32>
    %269 = vector.broadcast %cst_118 : f32 to vector<18x128xf32>
    %270 = arith.select %266, %268, %269 : vector<18x128xi1>, vector<18x128xf32>
    %cst_119 = arith.constant dense<0.000000e+00> : vector<128xf32>
    %271 = vector.multi_reduction <add>, %270, %cst_119 [0] : vector<18x128xf32> to vector<128xf32>
    %272 = vector.shape_cast %271 : vector<128xf32> to vector<1x128xf32>
    %c0_120 = arith.constant 0 : index
    %c0_121 = arith.constant 0 : index
    %c0_122 = arith.constant 0 : index
    %273 = vector.load %arg14[%c0_120, %c0_121, %c0_122] : memref<1x1x128xf32, #tpu.memory_space<vmem>>, vector<1x1x128xf32>
    %274 = vector.shape_cast %273 : vector<1x1x128xf32> to vector<1x128xf32>
    %275 = vector.shape_cast %272 : vector<1x128xf32> to vector<1x1x128xf32>
    tpu.vector_store %arg14[%c0_120, %c0_121, %c0_122], %275 {strides = array<i32>} : memref<1x1x128xf32, #tpu.memory_space<vmem>>, vector<1x1x128xf32>,
    return
  }
  func.func @transform_0(%arg0: i32) -> (i32, i32, i32) {
    %c0_i32 = arith.constant 0 : i32
    %c0_i32_0 = arith.constant 0 : i32
    %c0_i32_1 = arith.constant 0 : i32
    return %arg0, %c0_i32, %c0_i32_0 : i32, i32, i32
  }
  func.func @transform_1(%arg0: i32) -> (i32, i32) {
    %c0_i32 = arith.constant 0 : i32
    %c0_i32_0 = arith.constant 0 : i32
    %c0_i32_1 = arith.constant 0 : i32
    return %c0_i32, %c0_i32_0 : i32, i32
  }
  func.func @transform_2(%arg0: i32) -> (i32, i32) {
    %c0_i32 = arith.constant 0 : i32
    %c0_i32_0 = arith.constant 0 : i32
    %c0_i32_1 = arith.constant 0 : i32
    return %c0_i32, %c0_i32_0 : i32, i32
  }
  func.func @transform_3(%arg0: i32) -> (i32, i32) {
    %c0_i32 = arith.constant 0 : i32
    %c0_i32_0 = arith.constant 0 : i32
    %c0_i32_1 = arith.constant 0 : i32
    return %c0_i32, %c0_i32_0 : i32, i32
  }
  func.func @transform_4(%arg0: i32) -> (i32, i32) {
    %c0_i32 = arith.constant 0 : i32
    %c0_i32_0 = arith.constant 0 : i32
    %c0_i32_1 = arith.constant 0 : i32
    return %c0_i32, %c0_i32_0 : i32, i32
  }
  func.func @transform_5(%arg0: i32) -> (i32, i32) {
    %c0_i32 = arith.constant 0 : i32
    %c0_i32_0 = arith.constant 0 : i32
    %c0_i32_1 = arith.constant 0 : i32
    return %c0_i32, %c0_i32_0 : i32, i32
  }
  func.func @transform_6(%arg0: i32) -> (i32, i32) {
    %c0_i32 = arith.constant 0 : i32
    %c0_i32_0 = arith.constant 0 : i32
    %c0_i32_1 = arith.constant 0 : i32
    return %c0_i32, %c0_i32_0 : i32, i32
  }
  func.func @transform_7(%arg0: i32) -> (i32, i32) {
    %c0_i32 = arith.constant 0 : i32
    %c0_i32_0 = arith.constant 0 : i32
    %c0_i32_1 = arith.constant 0 : i32
    return %c0_i32, %c0_i32_0 : i32, i32
  }
  func.func @transform_8(%arg0: i32) -> (i32, i32) {
    %c0_i32 = arith.constant 0 : i32
    %c0_i32_0 = arith.constant 0 : i32
    %c0_i32_1 = arith.constant 0 : i32
    return %c0_i32, %c0_i32_0 : i32, i32
  }
  func.func @transform_9(%arg0: i32) -> (i32, i32) {
    %c0_i32 = arith.constant 0 : i32
    %c0_i32_0 = arith.constant 0 : i32
    %c0_i32_1 = arith.constant 0 : i32
    return %c0_i32, %c0_i32_0 : i32, i32
  }
  func.func @transform_10(%arg0: i32) -> (i32, i32) {
    %c0_i32 = arith.constant 0 : i32
    %c0_i32_0 = arith.constant 0 : i32
    %c0_i32_1 = arith.constant 0 : i32
    return %c0_i32, %c0_i32_0 : i32, i32
  }
  func.func @transform_11(%arg0: i32) -> (i32, i32) {
    %c0_i32 = arith.constant 0 : i32
    %c0_i32_0 = arith.constant 0 : i32
    %c0_i32_1 = arith.constant 0 : i32
    return %c0_i32, %c0_i32_0 : i32, i32
  }
  func.func @transform_12(%arg0: i32) -> (i32, i32) {
    %c0_i32 = arith.constant 0 : i32
    %c0_i32_0 = arith.constant 0 : i32
    %c0_i32_1 = arith.constant 0 : i32
    return %c0_i32, %c0_i32_0 : i32, i32
  }
  func.func @transform_13(%arg0: i32) -> (i32, i32, i32) {
    %c0_i32 = arith.constant 0 : i32
    %c0_i32_0 = arith.constant 0 : i32
    %c0_i32_1 = arith.constant 0 : i32
    return %arg0, %c0_i32, %c0_i32_0 : i32, i32, i32
  }
}

</mosaic_0001>

<bundles_post_ra>
// kernel: forward.1
= control target key start
LH: loop header
LB: loop body
LE: loop exit
PB: predicated region body
PF: predicated region fallthrough
CT: control target
= control target key end

     0   :  { %18 = vsyncpa [#allocation3], 0  ;;  %s4427_s0 = inlined_call_operand.vmem [shape: f32[2,8,256], index: 0, kind: input, shape index: {}]   ;;  %s4428_s1 = inlined_call_operand.hbm [shape: f32[9,256], index: 1, kind: input, shape index: {}]   ;;  %s4429_s2 = inlined_call_operand.vmem [shape: bf16[32,72], index: 2, kind: input, shape index: {}]   ;;  %s4430_s3 = inlined_call_operand.vmem [shape: f32[32,1], index: 3, kind: input, shape index: {}]   ;;  %s4431_s4 = inlined_call_operand.vmem [shape: bf16[2,32], index: 4, kind: input, shape index: {}]   ;;  %s4432_s5 = inlined_call_operand.vmem [shape: f32[2,1], index: 5, kind: input, shape index: {}]   ;;  %s4433_s6 = inlined_call_operand.vmem [shape: f32[2,2], index: 6, kind: input, shape index: {}]   ;;  %s4434_s7 = inlined_call_operand.vmem [shape: bf16[256,256], index: 7, kind: input, shape index: {}]   ;;  %s4435_s8 = inlined_call_operand.vmem [shape: bf16[32,72], index: 8, kind: input, shape index: {}]   ;;  %s4436_s9 = inlined_call_operand.vmem [shape: f32[32,1], index: 9, kind: input, shape index: {}]   ;;  %s4437_s10 = inlined_call_operand.hbm [shape: bf16[16,32], index: 10, kind: input, shape index: {}]   ;;  %s4438_s11 = inlined_call_operand.vmem [shape: f32[16,1], index: 11, kind: input, shape index: {}]   ;;  %s4439_s12 = inlined_call_operand.vmem [shape: f32[16,1], index: 12, kind: input, shape index: {}]   ;;  %s4440_s13 = inlined_call_operand.vmem [shape: f32[2,1,128], index: 13, kind: output, shape index: {}]  }
   0x1   :  { %19 = vsyncpa [#allocation5], 0  ;;  %s3637_s25 = smov 0  }
   0x2 LB: > { %s3542_s26 = smov [#allocation2]   ;;  %s3643_s28 = sadd.s32 4294967295, %s3540_s25   ;;  %s3540_s25 = sphi %s3637_s25, %s25_s25  }
   0x3   : > { %s346_s27 = sshll.u32 %s3542_s26, 4  ;;  %p3104_p0 = scmp.ge.s32.totalorder %s3540_s25, 1  ;;  %s347_s27 = int_to_ptr.vmem [resolvable:$true] %s346_s27 }
   0x4   : > { %p334_p1 = scmp.lt.s32.totalorder %s3540_s25, 3  ;;  %p4441_p3 = scmp.eq.s32.totalorder %s3643_s28, 0 }
   0x5   : > { %s3543_s30 = smov [#allocation4]   ;;  %s3470_s18 = scalar_lea.hbm %s4428_s1, 512 }
   0x6   : > { %p3647_p2 = pnand %p3104_p0, %p334_p1  ;;  %s383_s14 = sshll.u32 %s3543_s30, 4  ;;  %s3660_s14 = int_to_ptr.vmem [resolvable:$true] %s383_s14 }
   0x7   : > { %p3471_p6 = scmp.ne.s32.totalorder %s4428_s1, %s3470_s18  ;;  %p3477_p10 = scmp.lt.u32.totalorder %s3470_s18, %s4428_s1 }
   0x8   : > { %s4463_s29 = scalar_select %p3647_p2, 1, 0 }
   0x9   : > { %p3332_p4 = pneg %p3647_p2 }
   0xb   : > { %p3656_p5 = pnand %p4441_p3, %p3332_p4 }
   0xd   : > { %p3472_p7 = pneg %p3656_p5 }
   0xf   : > { %p3473_p8 = pnand %p3472_p7, %p3471_p6 }
  0x11   : > { %p3474_p9 = pneg %p3473_p8 }
  0x13   : > { %p3479_p11 = pnand %p3477_p10, %p3474_p9 }
  0x15   : > { %3482 = shalt.err (!%p3479_p11)
}
  0x16   : > { %s3483_s23 = scalar_lea.vmem %s347_s27, 512  ;;  %p3491_p1 = scmp.lt.s32.totalorder %s347_s27, %s347_s27 }
  0x17   : > { %p3484_p12 = scmp.ne.s32.totalorder %s347_s27, %s3483_s23  ;;  %p3492_p4 = scmp.lt.s32.totalorder %s3483_s23, %s3483_s23 }
  0x19   : > { %p3486_p13 = pnand %p3484_p12, %p3472_p7  ;;  %p3493_p3 = por %p3492_p4, %p3491_p1 }
  0x1b   : > { %p3487_p0 = pneg %p3486_p13 }
  0x1d   : > { %p3494_p2 = pnand %p3493_p3, %p3487_p0 }
  0x1f   : > { %3497 = shalt.err (!%p3494_p2)
}
  0x20   : > { %s3544_s24 = smov 256   ;;  %s3545_s26 = smov 16  }
  0x21   : > { %3335 = dma.hbm_to_vmem [thread:$0]  (!%p3656_p5), %s4428_s1, 512, %s347_s27, [#allocation3], %s3544_s24, %s3544_s24, %s3545_s26  }
  0x22   : > { %s3498_s19 = scalar_lea.hbm %s4437_s10, 128 }
  0x23   : > { %p3499_p6 = scmp.ne.s32.totalorder %s4437_s10, %s3498_s19  ;;  %p3505_p8 = scmp.lt.u32.totalorder %s3498_s19, %s4437_s10 }
  0x25   : > { %p3501_p2 = pnand %p3499_p6, %p3472_p7 }
  0x27   : > { %p3502_p3 = pneg %p3501_p2 }
  0x29   : > { %p3507_p9 = pnand %p3505_p8, %p3502_p3 }
  0x2b   : > { %3510 = shalt.err (!%p3507_p9)
}
  0x2c   : > { %s3511_s27 = scalar_lea.vmem %s3660_s14, 128  ;;  %p3519_p13 = scmp.lt.s32.totalorder %s3660_s14, %s3660_s14 }
  0x2d   : > { %p3512_p10 = scmp.ne.s32.totalorder %s3660_s14, %s3511_s27  ;;  %p3520_p0 = scmp.lt.s32.totalorder %s3511_s27, %s3511_s27 }
  0x2f   : > { %p3514_p11 = pnand %p3512_p10, %p3472_p7  ;;  %p3521_p1 = por %p3520_p0, %p3519_p13 }
  0x31   : > { %p3515_p12 = pneg %p3514_p11 }
  0x33   : > { %p3522_p4 = pnand %p3521_p1, %p3515_p12 }
  0x35   : > { %3525 = shalt.err (!%p3522_p4)
}
  0x36   : > { %s3546_s24 = smov 64   ;;  %s3547_s26 = smov 4  }
  0x37   : > { %3338 = dma.hbm_to_vmem [thread:$0]  (!%p3656_p5), %s4437_s10, 128, %s3660_s14, [#allocation5], %s3546_s24, %s3546_s24, %s3547_s26  }
  0x38   : > { %p4465_p6 = scmp.ne.s32.totalorder %s4463_s29, 0 }
  0x39   : > { %p4466_p7 = scmp.eq.s32.totalorder (!%p4465_p6), %s3643_s28, 0 }
  0x3a   : > { %413 = sbr.rel (%p4465_p6) target bundleno = 2826 (0xb0a), region = 72 }
  0x41   : > { %3531 = dma.done.wait (%p4466_p7), [#allocation3], 512   ;;  %p4467_p2 = pmov %p4466_p7 }
  0x43   : > { %3533 = vsyncadd (%p4467_p2), [#allocation3], 4294966784  ;;  %p4468_p3 = pmov %p4467_p2 }
  0x44   : > { %p4469_p8 = pmov %p4467_p2 }
  0x45   : > { %3535 = dma.done.wait (%p4468_p3), [#allocation5], 128  }
  0x46   : > { %3537 = vsyncadd (%p4469_p8), [#allocation5], 4294967168  ;;  %p459_p9 = scmp.lt.s32.totalorder %s3643_s28, 1  ;;  %s3548_s18 = smov 16   ;;  %v3554_v2 = vmov 0   ;;  %v677_v3 = vld [vmem:[%s4430_s3 + $0x8] sm:$0xff]  ;;  %v474_v7 = vlaneseq }
  0x47   : > { %s4459_s19 = smov 17   ;;  %s4457_s20 = smov 15   ;;  %756 = vmatprep.mubr.bf16.mxu0 %v3554_v2  ;;  %3377 = vset.pattern.permute.xlu1 %v3554_v2  ;;  %v676_v4 = vld [vmem:[%s4430_s3] sm:$0xff]  ;;  %v678_v5 = vld [vmem:[%s4430_s3 + $0x10] sm:$0xff]  ;;  %v679_v6 = vld [vmem:[%s4430_s3 + $0x18] sm:$0xff]  ;;  %vm4447_vm8 = vcmask 1043456  }
  0x48   : > { %s4496_s28 = smov (!%p459_p9, %s3643_s28), 1  ;;  %s4455_s21 = smov 1   ;;  %3376 = vset.pattern.permute.xlu0 %v3554_v2  ;;  %v3778_v8 = vshrl.u32 %v474_v7, 7  ;;  %v3780_v9 = vand.u32 127, %v474_v7  ;;  %vm4446_vm9 = vcmask 588800   ;;  %vm790_vm10 = vcmask 261120  }
  0x49   : > { %s3183_s29 = sshll.u32 %s4496_s28, 4  ;;  %s4453_s22 = smov 127   ;;  %v501_v12 = vld [vmem:[#allocation2 + $0x1] ss:$8 sm:$0x3]  ;;  %vm4445_vm11 = vcmask 1041408  }
  0x4a   : > { %s463_s17 = scalar_lea.vmem %s4427_s0, %s3183_s29  ;;  %s4443_s23 = smov 113   ;;  %v3783_v10 = vsub.s32 0, %v3778_v8  ;;  %v3786_v11 = vsub.s32 1, %v3778_v8  ;;  %v479_v13 = vld [vmem:[#allocation2] ss:$8 sm:$0x3] }
  0x4b   : > { %v3727_v0 = vld [vmem:[%s463_s17] sm:$0xff]  ;;  %v3733_v1 = vld [vmem:[%s463_s17 + $0x8] sm:$0xff]  ;;  %s3555_s27 = smov 112   ;;  %s4451_s24 = smov 111   ;;  %vm497_vm0 = vcmp.lt.s32.totalorder %v3780_v9, 16  ;;  %vm476_vm1 = vcmp.lt.s32.totalorder %v3780_v9, 17 }
  0x4c   : > { %493 = vrot.lane.b32.xlu1 %v3727_v0, %s3548_s18  ;;  %470 = vrot.lane.b32.xlu0 %v3727_v0, %s4459_s19  ;;  %v506_v16 = vrot.slane %v501_v12, %v3783_v10  ;;  %v484_v17 = vrot.slane %v479_v13, %v3783_v10  ;;  %v488_v18 = vrot.slane %v479_v13, %v3786_v11  ;;  %v523_v30 = vld [vmem:[#allocation2 + $0x2] ss:$8 sm:$0x3]  ;;  %v545_v31 = vld [vmem:[#allocation2 + $0x3] ss:$8 sm:$0x3] }
  0x4d   : > { %v510_v19 = vrot.slane %v501_v12, %v3786_v11  ;;  %vm519_vm2 = vcmp.lt.s32.totalorder %v3780_v9, 15  ;;  %vm541_vm3 = vcmp.lt.s32.totalorder %v3780_v9, 1  ;;  %v560_v36 = vld [vmem:[#allocation2 + $0x4] ss:$8 sm:$0x3]  ;;  %v528_v37 = vrot.slane %v523_v30, %v3783_v10  ;;  %s4461_s15 = smov 96  }
  0x4e   : > { %v532_v38 = vrot.slane %v523_v30, %v3786_v11  ;;  %v550_v39 = vrot.slane %v545_v31, %v3783_v10  ;;  %v554_v40 = vrot.slane %v545_v31, %v3786_v11  ;;  %v582_v41 = vld [vmem:[#allocation2 + $0x5] ss:$8 sm:$0x3]  ;;  %vm578_vm4 = vcmp.lt.s32.totalorder %v3780_v9, 127  ;;  %s3559_s26 = smov 80   ;;  %s4462_s30 = smov 64  }
  0x4f   : > { %v569_v46 = vrot.slane %v560_v36, %v3786_v11  ;;  %v565_v47 = vrot.slane %v560_v36, %v3783_v10  ;;  %v587_v50 = vrot.slane %v582_v41, %v3783_v10  ;;  %v591_v51 = vrot.slane %v582_v41, %v3786_v11  ;;  %s3561_s16 = smov 48   ;;  %s3562_s29 = smov 32  }
  0x50   : > { %495 = vrot.lane.b32.xlu1 %v3733_v1, %s3548_s18  ;;  %472 = vrot.lane.b32.xlu0 %v3733_v1, %s4459_s19  ;;  %vm4450_vm5 = vcmp.lt.s32.totalorder %v3780_v9, 113  ;;  %vm4449_vm6 = vcmp.lt.s32.totalorder %v3780_v9, 112  ;;  %vm4448_vm7 = vcmp.lt.s32.totalorder %v3780_v9, 111  ;;  %s4478_s14 = smov 1   ;;  %s4479_s19 = smov 127  }
  0x51   : > { %v573_v60 = vmul.f32 %v569_v46, %v3733_v1  ;;  %v572_v61 = vmul.f32 %v565_v47, %v3727_v0 }
  0x54   : > { %517 = vrot.lane.b32.xlu1 %v3733_v1, %s4457_s20  ;;  %515 = vrot.lane.b32.xlu0 %v3727_v0, %s4457_s20  ;;  %s4480_s20 = smov 113  }
  0x58   : > { %539 = vrot.lane.b32.xlu1 %v3733_v1, %s4455_s21  ;;  %537 = vrot.lane.b32.xlu0 %v3727_v0, %s4455_s21 }
  0x5c   : > { %576 = vrot.lane.b32.xlu1 %v3733_v1, %s4453_s22  ;;  %574 = vrot.lane.b32.xlu0 %v3727_v0, %s4453_s22  ;;  %s4475_s22 = smov 96  }
  0x60   : > { %598 = vrot.lane.b32.xlu1 %v3733_v1, %s4443_s23  ;;  %596 = vrot.lane.b32.xlu0 %v3727_v0, %s4443_s23 }
  0x64   : > { %620 = vrot.lane.b32.xlu1 %v3733_v1, %s3555_s27  ;;  %618 = vrot.lane.b32.xlu0 %v3727_v0, %s3555_s27 }
  0x68   : > { %642 = vrot.lane.b32.xlu1 %v3733_v1, %s4451_s24  ;;  %640 = vrot.lane.b32.xlu0 %v3727_v0, %s4451_s24 }
  0x6c   : > { %687 = vperm.xlu1 %3377, %v677_v3   ;;  %682 = vperm.xlu0 %3376, %v676_v4  }
  0x70   : > { %692 = vperm.xlu1 %3377, %v678_v5   ;;  %697 = vperm.xlu0 %3376, %v679_v6   ;;  %v604_v5 = vld [vmem:[#allocation2 + $0x6] ss:$8 sm:$0x3]  ;;  %v626_v6 = vld [vmem:[#allocation2 + $0x7] ss:$8 sm:$0x3] }
  0xbe   : > { %v494_v14 = vpop.permute.xlu1 %493  ;;  %v471_v15 = vpop.permute.xlu0 %470 }
  0xc2   : > { %v496_v20 = vpop.permute.xlu1 %495  ;;  %v473_v21 = vpop.permute.xlu0 %472 }
  0xc3   : > { %v498_v22 = vsel %vm497_vm0, %v494_v14, %v496_v20  ;;  %v499_v23 = vsel %vm497_vm0, %v496_v20, %v494_v14  ;;  %v477_v24 = vsel %vm476_vm1, %v471_v15, %v473_v21  ;;  %v478_v25 = vsel %vm476_vm1, %v473_v21, %v471_v15 }
  0xc4   : > { %v513_v26 = vmul.f32 %v506_v16, %v499_v23  ;;  %v491_v27 = vmul.f32 %v484_v17, %v478_v25  ;;  %v492_v28 = vmul.f32 %v488_v18, %v477_v24  ;;  %v514_v29 = vmul.f32 %v510_v19, %v498_v22  ;;  %v648_v19 = vld [vmem:[#allocation2 + $0x10] ss:$8 sm:$0x3] }
  0xc5   : > { %v609_v15 = vrot.slane %v604_v5, %v3783_v10  ;;  %v613_v16 = vrot.slane %v604_v5, %v3786_v11  ;;  %v631_v17 = vrot.slane %v626_v6, %v3783_v10  ;;  %v635_v18 = vrot.slane %v626_v6, %v3786_v11 }
  0xc6   : > { %v518_v32 = vpop.permute.xlu1 %517  ;;  %v516_v33 = vpop.permute.xlu0 %515  ;;  %v663_v34 = vpack.c.bf16 %v514_v29, %v492_v28  ;;  %v662_v35 = vpack.c.bf16 %v513_v26, %v491_v27  ;;  %v653_v26 = vrot.slane %v648_v19, %v3783_v10  ;;  %v657_v27 = vrot.slane %v648_v19, %v3786_v11 }
  0xc7   : > { %v520_v42 = vsel %vm519_vm2, %v516_v33, %v518_v32  ;;  %v521_v43 = vsel %vm519_vm2, %v518_v32, %v516_v33 }
  0xc8   : > { %724 = vmatprep.subr.bf16.mxu0 %v663_v34  ;;  %v535_v52 = vmul.f32 %v528_v37, %v521_v43  ;;  %v536_v53 = vmul.f32 %v532_v38, %v520_v42  ;;  %v3417_v43 = vld [vmem:[%s4429_s2] sm:$0xff]  }
  0xc9   : > { %725 = vmatpush1.bf16.msra.mxu0 %v662_v35 }
  0xca   : > { %v540_v44 = vpop.permute.xlu1 %539  ;;  %v538_v45 = vpop.permute.xlu0 %537 }
  0xcb   : > { %v542_v48 = vsel %vm541_vm3, %v538_v45, %v540_v44  ;;  %v543_v49 = vsel %vm541_vm3, %v540_v44, %v538_v45  ;;  %v3418_v44 = vld [vmem:[%s4429_s2 + $0x8] sm:$0xff]  }
  0xcc   : > { %v557_v54 = vmul.f32 %v550_v39, %v543_v49  ;;  %v558_v55 = vmul.f32 %v554_v40, %v542_v48 }
  0xce   : > { %v577_v56 = vpop.permute.xlu1 %576  ;;  %v575_v57 = vpop.permute.xlu0 %574  ;;  %v665_v58 = vpack.c.bf16 %v558_v55, %v536_v53  ;;  %v664_v59 = vpack.c.bf16 %v557_v54, %v535_v52 }
  0xcf   : > { %v579_v62 = vsel %vm578_vm4, %v575_v57, %v577_v56  ;;  %v580_v63 = vsel %vm578_vm4, %v577_v56, %v575_v57 }
  0xd0   : > { %v594_v3 = vmul.f32 %v587_v50, %v579_v62  ;;  %v595_v4 = vmul.f32 %v591_v51, %v580_v63  ;;  %726 = vmatprep.subr.bf16.mxu0 %v665_v58 }
  0xd1   : > { %727 = vmatpush1.bf16.msra.mxu0 %v664_v59 }
  0xd2   : > { %v599_v7 = vpop.permute.xlu1 %598  ;;  %v597_v12 = vpop.permute.xlu0 %596  ;;  %v667_v13 = vpack.c.bf16 %v595_v4, %v573_v60  ;;  %v666_v14 = vpack.c.bf16 %v594_v3, %v572_v61 }
  0xd3   : > { %v601_v20 = vsel %vm4450_vm5, %v597_v12, %v599_v7  ;;  %v602_v21 = vsel %vm4450_vm5, %v599_v7, %v597_v12 }
  0xd4   : > { %728 = vmatprep.subr.bf16.mxu0 %v667_v13  ;;  %v616_v28 = vmul.f32 %v609_v15, %v601_v20  ;;  %v617_v29 = vmul.f32 %v613_v16, %v602_v21  ;;  %v785_v20 = vld [vmem:[%s4431_s4] sm:$0x1] }
  0xd5   : > { %729 = vmatpush1.bf16.msra.mxu0 %v666_v14 }
  0xd6   : > { %v621_v22 = vpop.permute.xlu1 %620  ;;  %v619_v23 = vpop.permute.xlu0 %618 }
  0xd7   : > { %v623_v24 = vsel %vm4449_vm6, %v619_v23, %v621_v22  ;;  %v624_v25 = vsel %vm4449_vm6, %v621_v22, %v619_v23 }
  0xd8   : > { %v638_v30 = vmul.f32 %v631_v17, %v623_v24  ;;  %v639_v31 = vmul.f32 %v635_v18, %v624_v25 }
  0xda   : > { %v643_v32 = vpop.permute.xlu1 %642  ;;  %v641_v33 = vpop.permute.xlu0 %640  ;;  %v669_v34 = vpack.c.bf16 %v639_v31, %v617_v29  ;;  %v668_v35 = vpack.c.bf16 %v638_v30, %v616_v28  ;;  %v843_v28 = vld [vmem:[%s4432_s5] sm:$0x3] }
  0xdb   : > { %v645_v36 = vsel %vm4448_vm7, %v641_v33, %v643_v32  ;;  %v646_v37 = vsel %vm4448_vm7, %v643_v32, %v641_v33  ;;  %v3558_v33 = vmov 1  }
  0xdc   : > { %v660_v38 = vmul.f32 %v653_v26, %v645_v36  ;;  %v661_v39 = vmul.f32 %v657_v27, %v646_v37  ;;  %730 = vmatprep.subr.bf16.mxu0 %v669_v34  ;;  %3378 = vset.pattern.permute.xlu1 %v3558_v33  ;;  %v3563_v34 = vmov 0.0   ;;  %v849_v36 = vcvt.s32.f32 %v3778_v8 }
  0xdd   : > { %731 = vmatpush1.bf16.msra.mxu0 %v668_v35  ;;  %3379 = vset.pattern.permute.xlu0 %v3558_v33  ;;  %v3905_v35 = vadd.s32 8, %v3778_v8 }
  0xde   : > { %v670_v40 = vpack.c.bf16 %v660_v38, %v660_v38  ;;  %v671_v41 = vpack.c.bf16 %v661_v39, %v661_v39  ;;  %3216 = vmatprep.subr.bf16.mxu1 %v3563_v34  ;;  %v851_v38 = vmul.f32 2.0, %v849_v36 }
  0xdf   : > { %v850_v37 = vcvt.s32.f32 %v3905_v35 }
  0xe0   : > { %3115 = vmatprep.subr.msk.bf16.mxu0 %vm4447_vm8, %v671_v41  ;;  %v719_v42 = vsel %vm4447_vm8, %v670_v40, 0  ;;  %v853_v40 = vadd.f32 1.0, %v851_v38 }
  0xe1   : > { %733 = vmatpush1.bf16.msra.mxu0 %v719_v42  ;;  %v852_v39 = vmul.f32 2.0, %v850_v37  ;;  %v3565_v37 = vmov 1934713408  }
  0xe2   : > { %v856_v42 = vmul.f32 0.0625, %v853_v40  ;;  %v1141_v38 = vunpack.c.l.s4 %v3565_v37 }
  0xe3   : > { %v854_v41 = vadd.f32 1.0, %v852_v39 }
  0xe4   : > { %3116 = vmatmul.mubr.msk.bf16.vlgmr.msra.gmra.mrb[0].mxu0 %vm4446_vm9, %v3417_v43 }
  0xe5   : > { %766 = vmatprep.mubr.bf16.mxu0 %v3554_v2  ;;  %v857_v43 = vmul.f32 0.0625, %v854_v41 }
  0xeb   : > { %v683_v45 = vpop.permute.xlu0 %682  ;;  %v688_v46 = vpop.permute.xlu1 %687 }
  0xec   : > { %3117 = vmatmul.mubr.msk.bf16.gmra.mrb[4].mxu0 %vm4446_vm9, %v3418_v44  ;;  %v3119_v44 = vadd.f32 -1.0, %v856_v42 }
  0xed   : > { %826 = vmatprep.mubr.bf16.mxu0 %v3554_v2 }
  0xef   : > { %v693_v58 = vpop.permute.xlu1 %692  ;;  %v698_v4 = vpop.permute.xlu0 %697 }
 0x1b7   : > { %v758_v47 = vpop.f32.mrb[0].mxu0 }
 0x1b8   : > { %v759_v48 = vadd.f32 %v758_v47, %v683_v45  ;;  %v760_v49 = vpop.f32.mrb[1].mxu0 }
 0x1b9   : > { %v761_v50 = vadd.f32 %v760_v49, %v683_v45  ;;  %v762_v51 = vpop.f32.mrb[2].mxu0  ;;  %v3120_v45 = vadd.f32 -1.0, %v857_v43 }
 0x1ba   : > { %v763_v52 = vadd.f32 %v762_v51, %v688_v46  ;;  %v764_v53 = vpop.f32.mrb[3].mxu0  ;;  %v777_v55 = vmax.f32 %v759_v48, 0.0 }
 0x1bb   : > { %v765_v54 = vadd.f32 %v764_v53, %v688_v46  ;;  %v778_v57 = vmax.f32 %v761_v50, 0.0  ;;  %v3121_v46 = vld [vmem:[%s4433_s6 + $0x1] ss:$0 sm:$0xff] }
 0x1bc   : > { %v779_v56 = vmax.f32 %v763_v52, 0.0  ;;  %v864_v47 = vmul.f32 %v3121_v46, %v3119_v44  ;;  %v865_v48 = vmul.f32 %v3121_v46, %v3120_v45 }
 0x1bd   : > { %v780_v59 = vmax.f32 %v765_v54, 0.0  ;;  %v3564_v54 = vmov 1983009808  }
 0x1be   : > { %v786_v60 = vpack.c.bf16 %v779_v56, %v777_v55  ;;  %v1077_v55 = vunpack.c.l.s4 %v3564_v54 }
 0x1bf   : > { %v787_v61 = vpack.c.bf16 %v780_v59, %v778_v57  ;;  %v768_v62 = vpop.f32.mrb[4].mxu0 }
 0x1c0   : > { %v769_v63 = vadd.f32 %v768_v62, %v693_v58  ;;  %v770_v3 = vpop.f32.mrb[5].mxu0 }
 0x1c1   : > { %v771_v5 = vadd.f32 %v770_v3, %v693_v58  ;;  %v772_v6 = vpop.f32.mrb[6].mxu0  ;;  %794 = vmatprep.subr.bf16.mxu0 %v787_v61  ;;  %v1078_v61 = vunpack.c.0.s8 %v1077_v55 }
 0x1c2   : > { %v773_v7 = vadd.f32 %v772_v6, %v698_v4  ;;  %v774_v12 = vpop.f32.mrb[7].mxu0  ;;  %795 = vmatpush1.bf16.msra.mxu0 %v786_v60  ;;  %v781_v14 = vmax.f32 %v769_v63, 0.0 }
 0x1c3   : > { %v775_v13 = vadd.f32 %v774_v12, %v698_v4  ;;  %v782_v16 = vmax.f32 %v771_v5, 0.0  ;;  %v3917_v6 = vsub.s32 %v1078_v61, %v3778_v8 }
 0x1c4   : > { %v783_v15 = vmax.f32 %v773_v7, 0.0 }
 0x1c5   : > { %v784_v17 = vmax.f32 %v775_v13, 0.0 }
 0x1c6   : > { %v788_v18 = vpack.c.bf16 %v783_v15, %v781_v14 }
 0x1c7   : > { %v789_v19 = vpack.c.bf16 %v784_v17, %v782_v16 }
 0x1c9   : > { %796 = vmatprep.subr.bf16.mxu0 %v789_v19 }
 0x1ca   : > { %797 = vmatpush1.bf16.msra.mxu0 %v788_v18 }
 0x1cb   : > { %3234 = vmatprep.subr.bf16.mxu0 %v3563_v34 }
 0x1cd   : > { %3118 = vmatmul.mubr.msk.bf16.vlgmr.msra.gmra.mrb[8].mxu0 %vm790_vm10, %v785_v20 }
 0x2a0   : > { %v828_v21 = vpop.f32.mrb[8].mxu0 }
 0x2a1   : > { %v836_v22 = vsel %vm4445_vm11, %v828_v21, 0.0  ;;  %v830_v23 = vpop.f32.mrb[9].mxu0 }
 0x2a2   : > { %v837_v24 = vsel %vm4445_vm11, %v830_v23, 0.0  ;;  %v832_v25 = vpop.f32.mrb[10].mxu0 }
 0x2a3   : > { %v833_v26 = vpop.f32.mrb[11].mxu0  ;;  %v838_v27 = vadd.f32 %v837_v24, %v836_v22 }
 0x2a5   : > { %839 = vadd.xlane.f32.xlu1 %v838_v27 }
 0x2b6   : > { %1056 = vrot.lane.b32.xlu1 %v3733_v1, %s4461_s15 }
 0x2ba   : > { %1071 = vrot.lane.b32.xlu1 %v3733_v1, %s3548_s18 }
 0x332   : > { %v840_v29 = vpop.xlane.xlu1 %839 }
 0x333   : > { %v842_v30 = vmul.f32 0.00390625, %v840_v29 }
 0x335   : > { %v3873_v31 = vadd.f32 %v843_v28, %v842_v30 }
 0x337   : > { %v869_v32 = vrot.slane %v3873_v31, %v3786_v11 }
 0x339   : > { %871 = vrot.lane.b32.xlu0 %v869_v32, %s4455_s21 }
 0x33d   : > { %1031 = vrot.lane.b32.xlu0 %v3727_v0, %s3555_s27 }
 0x341   : > { %1034 = vrot.lane.b32.xlu0 %v3727_v0, %s4461_s15 }
 0x345   : > { %1037 = vrot.lane.b32.xlu0 %v3727_v0, %s3559_s26 }
 0x349   : > { %1040 = vrot.lane.b32.xlu0 %v3727_v0, %s4462_s30 }
 0x34d   : > { %1043 = vrot.lane.b32.xlu0 %v3727_v0, %s3561_s16 }
 0x351   : > { %1046 = vrot.lane.b32.xlu0 %v3727_v0, %s3562_s29 }
 0x355   : > { %1049 = vrot.lane.b32.xlu0 %v3727_v0, %s3548_s18 }
 0x359   : > { %1053 = vrot.lane.b32.xlu0 %v3733_v1, %s3555_s27 }
 0x35d   : > { %1059 = vrot.lane.b32.xlu0 %v3733_v1, %s3559_s26 }
 0x361   : > { %1062 = vrot.lane.b32.xlu0 %v3733_v1, %s4462_s30 }
 0x365   : > { %1065 = vrot.lane.b32.xlu0 %v3733_v1, %s3561_s16 }
 0x369   : > { %1068 = vrot.lane.b32.xlu0 %v3733_v1, %s3562_s29 }
 0x3ab   : > { %v872_v49 = vpop.permute.xlu0 %871 }
 0x3ac   : > { %v874_v50 = vadd.f32 %v872_v49, %v864_v47  ;;  %v875_v51 = vadd.f32 %v872_v49, %v865_v48  ;;  %v1142_v49 = vunpack.c.0.s8 %v1141_v38 }
 0x3ae   : > { %v876_v52 = vadd.f32 1.0, %v874_v50  ;;  %v877_v53 = vadd.f32 1.0, %v875_v51 }
 0x3af   : > { %v3912_v56 = vpop.permute.xlu0 %1031 }
 0x3b0   : > { %v878_v57 = vmul.f32 16.0, %v876_v52  ;;  %v879_v58 = vmul.f32 16.0, %v877_v53 }
 0x3b2   : > { %v3122_v59 = vadd.f32 -1.0, %v878_v57  ;;  %v3123_v60 = vadd.f32 -1.0, %v879_v58  ;;  %v3945_v58 = vsub.s32 %v1142_v49, %v3778_v8 }
 0x3b3   : > { %v3914_v62 = vpop.permute.xlu0 %1034 }
 0x3b4   : > { %v882_v63 = vmul.f32 0.5, %v3122_v59  ;;  %v883_v3 = vmul.f32 0.5, %v3123_v60  ;;  %v1075_v7 = vcombine.high %v3727_v0, %v3914_v62  ;;  %v1074_v45 = vcombine.low %v3727_v0, %v3914_v62 }
 0x3b6   : > { %v884_v4 = vfloor.f32 %v882_v63  ;;  %v885_v5 = vfloor.f32 %v883_v3  ;;  %v1089_v36 = vrot.slane %v1075_v7, %v3917_v6  ;;  %v1082_v0 = vrot.slane %v1074_v45, %v3917_v6 }
 0x3b7   : > { %v1038_v12 = vpop.permute.xlu0 %1037 }
 0x3b8   : > { %v3921_v13 = vsub.f32 %v883_v3, %v885_v5  ;;  %vm893_vm12 = vcmp.ge.f32.partialorder %v885_v5, 0.0  ;;  %vm895_vm13 = vcmp.le.f32.partialorder %v885_v5, 15.0  ;;  %v3923_v14 = vsub.f32 %v882_v63, %v884_v4 }
 0x3b9   : > { %vm892_vm14 = vcmp.ge.f32.partialorder %v884_v4, 0.0  ;;  %vm894_vm15 = vcmp.le.f32.partialorder %v884_v4, 15.0  ;;  %v898_v15 = vmax.f32 %v884_v4, 0.0  ;;  %v899_v16 = vmax.f32 %v885_v5, 0.0  ;;  %vm897_vm11 = vmand %vm893_vm12, %vm895_vm13 }
 0x3ba   : > { %v891_v17 = vsub.f32 1.0, %v3921_v13  ;;  %v890_v18 = vsub.f32 1.0, %v3923_v14  ;;  %v887_v19 = vadd.f32 1.0, %v885_v5  ;;  %v886_v20 = vadd.f32 1.0, %v884_v4  ;;  %vm896_vm9 = vmand %vm892_vm14, %vm894_vm15 }
 0x3bb   : > { %v900_v21 = vmin.f32 %v898_v15, 15.0  ;;  %v901_v22 = vmin.f32 %v899_v16, 15.0  ;;  %v1091_v23 = vcombine.high %v3912_v56, %v1038_v12  ;;  %v1041_v24 = vpop.permute.xlu0 %1040  ;;  %v1090_v46 = vcombine.low %v3912_v56, %v1038_v12 }
 0x3bc   : > { %v905_v25 = vsel %vm897_vm11, %v891_v17, 0.0  ;;  %v904_v26 = vsel %vm896_vm9, %v890_v18, 0.0  ;;  %v933_v27 = vmax.f32 %v887_v19, 0.0  ;;  %v932_v28 = vmax.f32 %v886_v20, 0.0 }
 0x3bd   : > { %921 = vperm.xlu0 %3379, %v905_v25   ;;  %916 = vperm.xlu1 %3378, %v904_v26   ;;  %v3312_v29 = vtrunc.f32 %v900_v21  ;;  %v3314_v30 = vtrunc.f32 %v901_v22  ;;  %vm927_vm12 = vcmp.ge.f32.partialorder %v887_v19, 0.0  ;;  %vm929_vm11 = vcmp.le.f32.partialorder %v887_v19, 15.0 }
 0x3be   : > { %v935_v32 = vmin.f32 %v933_v27, 15.0  ;;  %v934_v33 = vmin.f32 %v932_v28, 15.0  ;;  %v1105_v44 = vrot.slane %v1091_v23, %v3917_v6  ;;  %vm926_vm9 = vcmp.ge.f32.partialorder %v886_v20, 0.0  ;;  %vm3934_vm14 = vmand %vm927_vm12, %vm929_vm11 }
 0x3bf   : > { %v3313_v39 = vcvt.f32.s32 %v3312_v29  ;;  %v3315_v40 = vcvt.f32.s32 %v3314_v30  ;;  %v1044_v41 = vpop.permute.xlu0 %1043  ;;  %vm928_vm13 = vcmp.le.f32.partialorder %v886_v20, 15.0  ;;  %v1098_v56 = vrot.slane %v1090_v46, %v3917_v6 }
 0x3c0   : > { %v3318_v42 = vtrunc.f32 %v935_v32  ;;  %v3316_v43 = vtrunc.f32 %v934_v33  ;;  %v1154_v47 = vcombine.low %v1089_v36, %v1105_v44  ;;  %v1155_v48 = vcombine.high %v1089_v36, %v1105_v44  ;;  %vm3938_vm15 = vmand %vm926_vm9, %vm928_vm13 }
 0x3c1   : > { %907 = vperm.xlu0 %3379, %v3313_v39   ;;  %910 = vperm.xlu1 %3378, %v3315_v40   ;;  %v939_v59 = vsel %vm3934_vm14, %v3921_v13, 0.0  ;;  %v938_v60 = vsel %vm3938_vm15, %v3923_v14, 0.0  ;;  %v1138_v5 = vcombine.low %v1082_v0, %v1098_v56  ;;  %v1139_v7 = vcombine.high %v1082_v0, %v1098_v56  ;;  %v1057_v13 = vpop.permute.xlu1 %1056  ;;  %v963_v14 = vld [vmem:[%s4433_s6] sm:$0x1] }
 0x3c2   : > { %v3319_v50 = vcvt.f32.s32 %v3318_v42  ;;  %v3317_v51 = vcvt.f32.s32 %v3316_v43  ;;  %v3961_v16 = vrot.slane %v1154_v47, %v3945_v58  ;;  %v1211_v18 = vcombine.high %v3733_v1, %v1057_v13 }
 0x3c3   : > { %v1047_v53 = vpop.permute.xlu0 %1046  ;;  %v3967_v23 = vrot.slane %v1139_v7, %v3945_v58  ;;  %v3973_v25 = vrot.slane %v1138_v5, %v3945_v58  ;;  %vm3566_vm12 = vmmov 0   ;;  %v1210_v43 = vcombine.low %v3733_v1, %v1057_v13 }
 0x3c4   : > { %v1106_v55 = vcombine.low %v1041_v24, %v1047_v53  ;;  %v1107_v57 = vcombine.high %v1041_v24, %v1047_v53  ;;  %v3970_v24 = vrot.slane %v1155_v48, %v3945_v58  ;;  %3218 = vmatprep.mubr.msk.bf16.mxu1 %vm3566_vm12, %v3563_v34  ;;  %3236 = vmatprep.mubr.msk.bf16.mxu0 %vm3566_vm12, %v3563_v34  ;;  %vm1354_vm15 = vcmask 130048  }
 0x3c5   : > { %944 = vperm.xlu0 %3379, %v3319_v50   ;;  %941 = vperm.xlu1 %3378, %v3317_v51   ;;  %v1225_v33 = vrot.slane %v1211_v18, %v3917_v6  ;;  %v1072_v48 = vpop.permute.xlu1 %1071  ;;  %v1218_v51 = vrot.slane %v1210_v43, %v3917_v6  ;;  %v964_v43 = vcvt.s32.f32 %v3780_v9 }
 0x3c6   : > { %v1114_v62 = vrot.slane %v1106_v55, %v3917_v6  ;;  %v1121_v63 = vrot.slane %v1107_v57, %v3917_v6 }
 0x3c7   : > { %v1050_v61 = vpop.permute.xlu0 %1049 }
 0x3c8   : > { %v1122_v3 = vcombine.low %v1044_v41, %v1050_v61  ;;  %v1123_v4 = vcombine.high %v1044_v41, %v1050_v61 }
 0x3c9   : > { %955 = vperm.xlu0 %3379, %v939_v59   ;;  %950 = vperm.xlu1 %3378, %v938_v60  }
 0x3ca   : > { %v1130_v12 = vrot.slane %v1122_v3, %v3917_v6  ;;  %v1137_v15 = vrot.slane %v1123_v4, %v3917_v6 }
 0x3cb   : > { %v1054_v17 = vpop.permute.xlu0 %1053 }
 0x3cc   : > { %v1170_v19 = vcombine.low %v1114_v62, %v1130_v12  ;;  %v1171_v20 = vcombine.high %v1114_v62, %v1130_v12  ;;  %v1186_v21 = vcombine.low %v1121_v63, %v1137_v15  ;;  %v1187_v22 = vcombine.high %v1121_v63, %v1137_v15 }
 0x3cd   : > { %3381 = vset.pattern.permute.xlu0 %v3554_v2  ;;  %3380 = vset.pattern.permute.xlu1 %v3554_v2 }
 0x3ce   : > { %977 = vperm.xlu0 %3381, %v3873_v31   ;;  %971 = vperm.xlu1 %3380, %v963_v14   ;;  %v3977_v26 = vrot.slane %v1171_v20, %v3945_v58  ;;  %v3980_v27 = vrot.slane %v1186_v21, %v3945_v58  ;;  %v3983_v28 = vrot.slane %v1187_v22, %v3945_v58 }
 0x3cf   : > { %v1060_v29 = vpop.permute.xlu0 %1059  ;;  %v1178_v30 = vrot.slane %v1170_v19, %v3945_v58 }
 0x3d0   : > { %v1227_v32 = vcombine.high %v1054_v17, %v1060_v29  ;;  %v1207_v36 = vcombine.high %v3961_v16, %v3980_v27  ;;  %v1204_v39 = vcombine.low %v3967_v23, %v3977_v26  ;;  %v1209_v40 = vcombine.high %v3970_v24, %v3983_v28 }
 0x3d1   : > { %v1203_v37 = vcombine.high %v3973_v25, %v1178_v30  ;;  %v1226_v41 = vcombine.low %v1054_v17, %v1060_v29  ;;  %v1206_v44 = vcombine.low %v3961_v16, %v3980_v27  ;;  %v1208_v45 = vcombine.low %v3970_v24, %v3983_v28 }
 0x3d2   : > { %v1241_v38 = vrot.slane %v1227_v32, %v3917_v6  ;;  %v1202_v13 = vcombine.low %v3973_v25, %v1178_v30  ;;  %v1205_v14 = vcombine.high %v3967_v23, %v3977_v26 }
 0x3d3   : > { %v1063_v42 = vpop.permute.xlu0 %1062  ;;  %v1234_v49 = vrot.slane %v1226_v41, %v3917_v6 }
 0x3d4   : > { %v1290_v46 = vcombine.low %v1225_v33, %v1241_v38  ;;  %v1291_v47 = vcombine.high %v1225_v33, %v1241_v38 }
 0x3d5   : > { %v1274_v54 = vcombine.low %v1218_v51, %v1234_v49  ;;  %v1275_v55 = vcombine.high %v1218_v51, %v1234_v49 }
 0x3d6   : > { %v1298_v63 = vrot.slane %v1290_v46, %v3945_v58  ;;  %v1305_v15 = vrot.slane %v1291_v47, %v3945_v58 }
 0x3d7   : > { %v1066_v50 = vpop.permute.xlu0 %1065  ;;  %v1289_v62 = vrot.slane %v1275_v55, %v3945_v58  ;;  %v1282_v3 = vrot.slane %v1274_v54, %v3945_v58 }
 0x3d8   : > { %v1258_v52 = vcombine.low %v1066_v50, %v1072_v48  ;;  %v1259_v53 = vcombine.high %v1066_v50, %v1072_v48  ;;  %v965_v48 = vmul.f32 2.0, %v964_v43 }
 0x3da   : > { %v1266_v56 = vrot.slane %v1258_v52, %v3917_v6  ;;  %v1273_v59 = vrot.slane %v1259_v53, %v3917_v6 }
 0x3db   : > { %v1069_v57 = vpop.permute.xlu0 %1068 }
 0x3dc   : > { %v1242_v1 = vcombine.low %v1063_v42, %v1069_v57  ;;  %v1243_v0 = vcombine.high %v1063_v42, %v1069_v57 }
 0x3de   : > { %v1250_v60 = vrot.slane %v1242_v1, %v3917_v6  ;;  %v1257_v61 = vrot.slane %v1243_v0, %v3917_v6 }
 0x3e0   : > { %v1306_v4 = vcombine.low %v1250_v60, %v1266_v56  ;;  %v1307_v5 = vcombine.high %v1250_v60, %v1266_v56  ;;  %v1322_v7 = vcombine.low %v1257_v61, %v1273_v59  ;;  %v1323_v12 = vcombine.high %v1257_v61, %v1273_v59 }
 0x3e2   : > { %v1321_v16 = vrot.slane %v1307_v5, %v3945_v58  ;;  %v1330_v17 = vrot.slane %v1322_v7, %v3945_v58  ;;  %v1337_v18 = vrot.slane %v1323_v12, %v3945_v58  ;;  %v1314_v19 = vrot.slane %v1306_v4, %v3945_v58 }
 0x3e4   : > { %v1338_v20 = vcombine.low %v1282_v3, %v1314_v19  ;;  %v1339_v21 = vcombine.high %v1282_v3, %v1314_v19  ;;  %v1341_v22 = vcombine.high %v1289_v62, %v1321_v16  ;;  %v1343_v24 = vcombine.high %v1298_v63, %v1330_v17 }
 0x3e5   : > { %v1340_v27 = vcombine.low %v1289_v62, %v1321_v16  ;;  %v1345_v28 = vcombine.high %v1305_v15, %v1337_v18  ;;  %v1342_v29 = vcombine.low %v1298_v63, %v1330_v17  ;;  %v1344_v32 = vcombine.low %v1305_v15, %v1337_v18 }
 0x3e6   : > { %v1346_v25 = vpack.c.bf16 %v1338_v20, %v1202_v13  ;;  %v1349_v30 = vpack.c.bf16 %v1341_v22, %v1205_v14  ;;  %v1347_v33 = vpack.c.bf16 %v1339_v21, %v1203_v37  ;;  %v1351_v23 = vpack.c.bf16 %v1343_v24, %v1207_v36 }
 0x3e7   : > { %v1348_v26 = vpack.c.bf16 %v1340_v27, %v1204_v39  ;;  %v1353_v38 = vpack.c.bf16 %v1345_v28, %v1209_v40  ;;  %v4021_v41 = vpack.c.bf16 %v1342_v29, %v1206_v44  ;;  %v4023_v42 = vpack.c.bf16 %v1344_v32, %v1208_v45 }
 0x3e8   : > { %3217 = vmatpush3.bf16.msra.mxu1 %v1346_v25  ;;  %3235 = vmatpush3.bf16.msra.mxu0 %v1349_v30  ;;  %v966_v36 = vadd.f32 1.0, %v965_v48 }
 0x3e9   : > { %3222 = vmatprep.subr.bf16.mxu1 %v3563_v34  ;;  %3246 = vmatprep.subr.bf16.mxu0 %v3563_v34 }
 0x3ea   : > { %v967_v44 = vmul.f32 0.0625, %v966_v36 }
 0x3ec   : > { %v3124_v1 = vadd.f32 -1.0, %v967_v44 }
 0x43c   : > { %v922_v46 = vpop.permute.xlu0 %921  ;;  %v917_v47 = vpop.permute.xlu1 %916 }
 0x440   : > { %v908_v49 = vpop.permute.xlu0 %907  ;;  %v911_v37 = vpop.permute.xlu1 %910 }
 0x441   : > { %vm912_vm11 = vcmp.eq.s32.totalorder %v3780_v9, %v908_v49  ;;  %vm913_vm9 = vcmp.eq.s32.totalorder %v3780_v9, %v911_v37 }
 0x442   : > { %v924_v51 = vsel %vm912_vm11, %v917_v47, 0.0  ;;  %v925_v52 = vsel %vm913_vm9, %v922_v46, 0.0 }
 0x444   : > { %v945_v39 = vpop.permute.xlu0 %944  ;;  %v942_v40 = vpop.permute.xlu1 %941 }
 0x445   : > { %vm947_vm13 = vcmp.eq.s32.totalorder %v3780_v9, %v945_v39  ;;  %vm946_vm14 = vcmp.eq.s32.totalorder %v3780_v9, %v942_v40 }
 0x448   : > { %v956_v45 = vpop.permute.xlu0 %955  ;;  %v951_v50 = vpop.permute.xlu1 %950 }
 0x449   : > { %v959_v53 = vsel %vm947_vm13, %v956_v45, 0.0  ;;  %v958_v54 = vsel %vm946_vm14, %v951_v50, 0.0 }
 0x44a   : > { %v961_v55 = vadd.f32 %v959_v53, %v925_v52  ;;  %v960_v57 = vadd.f32 %v958_v54, %v924_v51 }
 0x44c   : > { %v4032_v0 = vpack.c.bf16 %v961_v55, %v960_v57 }
 0x44d   : > { %v972_v56 = vpop.permute.xlu1 %971  ;;  %v978_v60 = vpop.permute.xlu0 %977 }
 0x44e   : > { %v974_v59 = vmul.f32 %v3124_v1, %v972_v56  ;;  %3219 = vmatmul.mubr.msk.bf16.vlgmr.msra.gmra.mrb[0].mxu1 %vm1354_vm15, %v4032_v0  ;;  %3237 = vmatmul.mubr.msk.bf16.vlgmr.msra.gmra.mrb[12].mxu0 %vm1354_vm15, %v4032_v0 }
 0x44f   : > { %3223 = vmatpush3.bf16.msra.mxu1 %v1347_v33  ;;  %3247 = vmatpush3.bf16.msra.mxu0 %v1351_v23 }
 0x450   : > { %v980_v61 = vadd.f32 %v978_v60, %v974_v59  ;;  %3224 = vmatprep.mubr.msk.bf16.mxu1 %vm3566_vm12, %v3563_v34  ;;  %3228 = vmatprep.subr.bf16.mxu1 %v3563_v34 }
 0x451   : > { %3248 = vmatprep.mubr.msk.bf16.mxu0 %vm3566_vm12, %v3563_v34  ;;  %3258 = vmatprep.subr.bf16.mxu0 %v3563_v34 }
 0x452   : > { %v981_v62 = vadd.f32 1.0, %v980_v61 }
 0x454   : > { %v982_v63 = vmul.f32 16.0, %v981_v62 }
 0x456   : > { %v3125_v3 = vadd.f32 -1.0, %v982_v63  ;;  %3225 = vmatmul.mubr.msk.bf16.vlgmr.msra.gmra.mrb[4].mxu1 %vm1354_vm15, %v4032_v0  ;;  %3249 = vmatmul.mubr.msk.bf16.vlgmr.msra.gmra.mrb[16].mxu0 %vm1354_vm15, %v4032_v0 }
 0x457   : > { %3229 = vmatpush3.bf16.msra.mxu1 %v1348_v26  ;;  %3259 = vmatpush3.bf16.msra.mxu0 %v1353_v38 }
 0x458   : > { %v984_v4 = vmul.f32 0.5, %v3125_v3  ;;  %3230 = vmatprep.mubr.msk.bf16.mxu1 %vm3566_vm12, %v3563_v34  ;;  %3240 = vmatprep.subr.bf16.mxu1 %v3563_v34 }
 0x459   : > { %3260 = vmatprep.mubr.msk.bf16.mxu0 %vm3566_vm12, %v3563_v34  ;;  %3270 = vmatprep.subr.bf16.mxu0 %v3563_v34 }
 0x45a   : > { %v985_v5 = vfloor.f32 %v984_v4 }
 0x45c   : > { %v986_v7 = vadd.f32 1.0, %v985_v5  ;;  %v987_v12 = vsub.f32 %v984_v4, %v985_v5  ;;  %v992_v15 = vmax.f32 %v985_v5, 0.0  ;;  %vm989_vm13 = vcmp.ge.f32.partialorder %v985_v5, 0.0 }
 0x45d   : > { %vm990_vm14 = vcmp.le.f32.partialorder %v985_v5, 15.0 }
 0x45e   : > { %vm1008_vm11 = vcmp.ge.f32.partialorder %v986_v7, 0.0  ;;  %vm1009_vm9 = vcmp.le.f32.partialorder %v986_v7, 15.0  ;;  %v1011_v13 = vmax.f32 %v986_v7, 0.0  ;;  %3231 = vmatmul.mubr.msk.bf16.vlgmr.msra.gmra.mrb[8].mxu1 %vm1354_vm15, %v4032_v0  ;;  %3261 = vmatmul.mubr.msk.bf16.vlgmr.msra.gmra.mrb[20].mxu0 %vm1354_vm15, %v4032_v0  ;;  %v988_v14 = vsub.f32 1.0, %v987_v12  ;;  %vm991_vm7 = vmand %vm989_vm13, %vm990_vm14 }
 0x45f   : > { %v993_v16 = vmin.f32 %v992_v15, 15.0  ;;  %3241 = vmatpush3.bf16.msra.mxu1 %v4021_v41  ;;  %3242 = vmatprep.mubr.msk.bf16.mxu1 %vm3566_vm12, %v3563_v34  ;;  %vm1010_vm8 = vmand %vm1008_vm11, %vm1009_vm9  ;;  %vm2384_vm11 = vcmask 916480   ;;  %vm4488_vm13 = vcmask 1043456  }
 0x460   : > { %v1012_v17 = vmin.f32 %v1011_v13, 15.0  ;;  %3252 = vmatprep.subr.bf16.mxu1 %v3563_v34  ;;  %3272 = vmatprep.mubr.msk.bf16.mxu0 %vm3566_vm12, %v3563_v34  ;;  %v995_v21 = vsel %vm991_vm7, %v988_v14, 0.0  ;;  %v1014_v24 = vsel %vm1010_vm8, %v987_v12, 0.0  ;;  %vm4489_vm14 = vmmov %vm4488_vm13 }
 0x461   : > { %v3320_v18 = vtrunc.f32 %v993_v16  ;;  %v1005_v28 = vrot.slane %v995_v21, %v3783_v10  ;;  %v1024_v32 = vrot.slane %v1014_v24, %v3783_v10  ;;  %v3419_v21 = vld [vmem:[%s4434_s7] ss:$8 sps:$4 sm:$0xff]   ;;  %v3422_v24 = vld [vmem:[%s4434_s7 + $0x10] ss:$8 sps:$4 sm:$0xff]  }
 0x462   : > { %v3322_v19 = vtrunc.f32 %v1012_v17 }
 0x463   : > { %v3321_v20 = vcvt.f32.s32 %v3320_v18 }
 0x464   : > { %v3323_v22 = vcvt.f32.s32 %v3322_v19 }
 0x465   : > { %v999_v27 = vrot.slane %v3321_v20, %v3783_v10 }
 0x466   : > { %v1018_v29 = vrot.slane %v3323_v22, %v3783_v10  ;;  %3243 = vmatmul.mubr.msk.bf16.vlgmr.msra.gmra.mrb[12].mxu1 %vm1354_vm15, %v4032_v0  ;;  %v3421_v22 = vld [vmem:[%s4434_s7 + $0x4] ss:$8 sps:$4 sm:$0xff]  }
 0x467   : > { %vm1000_vm6 = vcmp.eq.s32.totalorder %v3778_v8, %v999_v27  ;;  %vm1001_vm5 = vcmp.eq.s32.totalorder %v3905_v35, %v999_v27  ;;  %3253 = vmatpush3.bf16.msra.mxu1 %v4023_v42  ;;  %3254 = vmatprep.mubr.msk.bf16.mxu1 %vm3566_vm12, %v3563_v34  ;;  %v3427_v27 = vld [vmem:[%s4434_s7 + $0x24] ss:$8 sps:$4 sm:$0xff]  }
 0x468   : > { %vm1019_vm7 = vcmp.eq.s32.totalorder %v3778_v8, %v1018_v29  ;;  %vm1020_vm8 = vcmp.eq.s32.totalorder %v3905_v35, %v1018_v29  ;;  %3264 = vmatprep.subr.bf16.mxu1 %v3563_v34  ;;  %v1006_v25 = vsel %vm1000_vm6, %v1005_v28, 0.0  ;;  %v1007_v30 = vsel %vm1001_vm5, %v1005_v28, 0.0  ;;  %v3425_v28 = vld [vmem:[%s4434_s7 + $0x20] ss:$8 sps:$4 sm:$0xff]   ;;  %v3430_v29 = vld [vmem:[%s4434_s7 + $0x34] ss:$8 sps:$4 sm:$0xff]  }
 0x469   : > { %v1025_v33 = vsel %vm1019_vm7, %v1024_v32, 0.0  ;;  %v1026_v23 = vsel %vm1020_vm8, %v1024_v32, 0.0  ;;  %v3428_v32 = vld [vmem:[%s4434_s7 + $0x30] ss:$8 sps:$4 sm:$0xff]   ;;  %vm2376_vm5 = vcmask 392192   ;;  %vm2378_vm6 = vcmask 523264  }
 0x46a   : > { %v1027_v26 = vadd.f32 %v1025_v33, %v1006_v25  ;;  %v1028_v38 = vadd.f32 %v1026_v23, %v1007_v30  ;;  %v3433_v25 = vld [vmem:[%s4434_s7 + $0x44] ss:$8 sps:$4 sm:$0xff]   ;;  %v3431_v30 = vld [vmem:[%s4434_s7 + $0x40] ss:$8 sps:$4 sm:$0xff]   ;;  %v3436_v33 = vld [vmem:[%s4434_s7 + $0x54] ss:$8 sps:$4 sm:$0xff]  }
 0x46b   : > { %v3434_v23 = vld [vmem:[%s4434_s7 + $0x50] ss:$8 sps:$4 sm:$0xff]   ;;  %vm4490_vm7 = vcmask 588800  }
 0x46c   : > { %v1029_v41 = vpack.c.bf16 %v1028_v38, %v1027_v26  ;;  %v3439_v26 = vld [vmem:[%s4434_s7 + $0x64] ss:$8 sps:$4 sm:$0xff]   ;;  %v3437_v38 = vld [vmem:[%s4434_s7 + $0x60] ss:$8 sps:$4 sm:$0xff]   ;;  %vm4491_vm8 = vmmov %vm4490_vm7 }
 0x46e   : > { %3255 = vmatmul.mubr.msk.bf16.vlgmr.msra.gmra.mrb[16].mxu1 %vm1354_vm15, %v4032_v0  ;;  %3271 = vmatpush3.bf16.msra.mxu0 %v1029_v41 }
 0x46f   : > { %3265 = vmatpush3.bf16.msra.mxu1 %v1029_v41  ;;  %3266 = vmatprep.mubr.msk.bf16.mxu1 %vm3566_vm12, %v3563_v34 }
 0x470   : > { %3276 = vmatprep.subr.bf16.mxu1 %v3563_v34  ;;  %3282 = vmatprep.subr.bf16.mxu0 %v3563_v34 }
 0x521   : > { %v1392_v42 = vpop.f32.mrb[0].mxu1  ;;  %v1515_v43 = vpop.f32.mrb[12].mxu0 }
 0x522   : > { %v3220_v46 = vpop.f32.mrb[1].mxu1  ;;  %v3238_v47 = vpop.f32.mrb[13].mxu0 }
 0x523   : > { %v1395_v48 = vpop.f32.mrb[2].mxu1  ;;  %v1518_v49 = vpop.f32.mrb[14].mxu0  ;;  %v3443_v46 = vld [vmem:[%s4434_s7 + $0x80] ss:$8 sps:$4 sm:$0xff]   ;;  %v3448_v47 = vld [vmem:[%s4434_s7 + $0x94] ss:$8 sps:$4 sm:$0xff]  }
 0x524   : > { %v1686_v37 = vpack.c.bf16 %v1395_v48, %v1392_v42  ;;  %v1689_v36 = vpack.c.bf16 %v1518_v49, %v1515_v43  ;;  %v3221_v39 = vpop.f32.mrb[3].mxu1  ;;  %v3239_v40 = vpop.f32.mrb[15].mxu0  ;;  %v3440_v42 = vld [vmem:[%s4434_s7 + $0x70] ss:$8 sps:$4 sm:$0xff]   ;;  %v3445_v43 = vld [vmem:[%s4434_s7 + $0x84] ss:$8 sps:$4 sm:$0xff]  }
 0x525   : > { %v3446_v48 = vld [vmem:[%s4434_s7 + $0x90] ss:$8 sps:$4 sm:$0xff]   ;;  %v3451_v49 = vld [vmem:[%s4434_s7 + $0xa4] ss:$8 sps:$4 sm:$0xff]  }
 0x526   : > { %3267 = vmatmul.mubr.msk.bf16.vlgmr.msra.gmra.mrb[20].mxu1 %vm1354_vm15, %v1686_v37  ;;  %v3449_v37 = vld [vmem:[%s4434_s7 + $0xa0] ss:$8 sps:$4 sm:$0xff]   ;;  %v3452_v39 = vld [vmem:[%s4434_s7 + $0xb0] ss:$8 sps:$4 sm:$0xff]  }
 0x527   : > { %3277 = vmatpush3.bf16.msra.mxu1 %v1029_v41  ;;  %3278 = vmatprep.mubr.msk.bf16.mxu1 %vm3566_vm12, %v3563_v34 }
 0x528   : > { %3288 = vmatprep.subr.bf16.mxu1 %v3563_v34 }
 0x529   : > { %v1433_v44 = vpop.f32.mrb[4].mxu1  ;;  %v1597_v45 = vpop.f32.mrb[16].mxu0 }
 0x52a   : > { %v3226_v50 = vpop.f32.mrb[5].mxu1  ;;  %v3250_v51 = vpop.f32.mrb[17].mxu0 }
 0x52b   : > { %v1436_v52 = vpop.f32.mrb[6].mxu1  ;;  %v1600_v53 = vpop.f32.mrb[18].mxu0 }
 0x52c   : > { %v1687_v54 = vpack.c.bf16 %v1436_v52, %v1433_v44  ;;  %v1691_v55 = vpack.c.bf16 %v1600_v53, %v1597_v45  ;;  %v3227_v57 = vpop.f32.mrb[7].mxu1  ;;  %v3251_v1 = vpop.f32.mrb[19].mxu0 }
 0x52e   : > { %3273 = vmatmul.mubr.msk.bf16.vlgmr.msra.gmra.mrb[24].mxu0 %vm1354_vm15, %v1687_v54 }
 0x52f   : > { %3283 = vmatpush3.bf16.msra.mxu0 %v1029_v41  ;;  %3284 = vmatprep.mubr.msk.bf16.mxu0 %vm3566_vm12, %v3563_v34 }
 0x530   : > { %3294 = vmatprep.subr.bf16.mxu0 %v3563_v34 }
 0x531   : > { %v1474_v0 = vpop.f32.mrb[8].mxu1  ;;  %v1679_v56 = vpop.f32.mrb[20].mxu0 }
 0x532   : > { %v3232_v59 = vpop.f32.mrb[9].mxu1  ;;  %v3262_v60 = vpop.f32.mrb[21].mxu0 }
 0x533   : > { %v1477_v61 = vpop.f32.mrb[10].mxu1  ;;  %v1682_v62 = vpop.f32.mrb[22].mxu0 }
 0x534   : > { %v1688_v63 = vpack.c.bf16 %v1477_v61, %v1474_v0  ;;  %v1693_v3 = vpack.c.bf16 %v1682_v62, %v1679_v56  ;;  %v3233_v4 = vpop.f32.mrb[11].mxu1  ;;  %v3263_v5 = vpop.f32.mrb[23].mxu0 }
 0x536   : > { %3279 = vmatmul.mubr.msk.bf16.vlgmr.msra.gmra.mrb[24].mxu1 %vm1354_vm15, %v1688_v63  ;;  %3285 = vmatmul.mubr.msk.bf16.vlgmr.msra.gmra.mrb[28].mxu0 %vm1354_vm15, %v1689_v36  ;;  %v3454_v36 = vld [vmem:[%s4434_s7 + $0xb4] ss:$8 sps:$4 sm:$0xff]  }
 0x537   : > { %3289 = vmatpush3.bf16.msra.mxu1 %v1029_v41  ;;  %3295 = vmatpush3.bf16.msra.mxu0 %v1029_v41 }
 0x538   : > { %3290 = vmatprep.mubr.msk.bf16.mxu1 %vm3566_vm12, %v3563_v34  ;;  %3296 = vmatprep.mubr.msk.bf16.mxu0 %vm3566_vm12, %v3563_v34 }
 0x539   : > { %v1556_v7 = vpop.f32.mrb[12].mxu1  ;;  %3300 = vmatprep.subr.bf16.mxu1 %v3563_v34  ;;  %3306 = vmatprep.subr.bf16.mxu0 %v3563_v34 }
 0x53a   : > { %v3244_v12 = vpop.f32.mrb[13].mxu1 }
 0x53b   : > { %v1559_v15 = vpop.f32.mrb[14].mxu1 }
 0x53c   : > { %v1690_v13 = vpack.c.bf16 %v1559_v15, %v1556_v7  ;;  %v3245_v14 = vpop.f32.mrb[15].mxu1 }
 0x53e   : > { %3291 = vmatmul.mubr.msk.bf16.vlgmr.msra.gmra.mrb[28].mxu1 %vm1354_vm15, %v1690_v13  ;;  %3297 = vmatmul.mubr.msk.bf16.vlgmr.msra.gmra.mrb[32].mxu0 %vm1354_vm15, %v1691_v55 }
 0x53f   : > { %3301 = vmatpush3.bf16.msra.mxu1 %v1029_v41  ;;  %3307 = vmatpush3.bf16.msra.mxu0 %v1029_v41  ;;  %v3442_v41 = vld [vmem:[%s4434_s7 + $0x74] ss:$8 sps:$4 sm:$0xff]  }
 0x540   : > { %3302 = vmatprep.mubr.msk.bf16.mxu1 %vm3566_vm12, %v3563_v34  ;;  %3308 = vmatprep.mubr.msk.bf16.mxu0 %vm3566_vm12, %v3563_v34  ;;  %v3424_v34 = vld [vmem:[%s4434_s7 + $0x14] ss:$8 sps:$4 sm:$0xff]   ;;  %vm2380_vm12 = vcmask 654336  }
 0x541   : > { %v1638_v16 = vpop.f32.mrb[16].mxu1  ;;  %2587 = vmatprep.subr.bf16.mxu1 %v3421_v22 }
 0x542   : > { %v3256_v17 = vpop.f32.mrb[17].mxu1 }
 0x543   : > { %v1641_v18 = vpop.f32.mrb[18].mxu1 }
 0x544   : > { %v1692_v19 = vpack.c.bf16 %v1641_v18, %v1638_v16  ;;  %v3257_v20 = vpop.f32.mrb[19].mxu1 }
 0x546   : > { %3303 = vmatmul.mubr.msk.bf16.vlgmr.msra.gmra.mrb[32].mxu1 %vm1354_vm15, %v1692_v19  ;;  %3309 = vmatmul.mubr.msk.bf16.vlgmr.msra.gmra.mrb[36].mxu0 %vm1354_vm15, %v1693_v3 }
 0x547   : > { %2894 = vmatprep.mubr.bf16.mxu0 %v3554_v2  ;;  %2588 = vmatpush1.bf16.msra.mxu1 %v3419_v21 }
 0x548   : > { %2589 = vmatprep.subr.bf16.mxu1 %v3424_v34 }
 0x54b   : > { %2590 = vmatpush1.bf16.msra.mxu1 %v3422_v24 }
 0x54c   : > { %2591 = vmatprep.subr.bf16.mxu1 %v3427_v27 }
 0x54f   : > { %2592 = vmatpush1.bf16.msra.mxu1 %v3425_v28 }
 0x550   : > { %2593 = vmatprep.subr.bf16.mxu1 %v3430_v29 }
 0x553   : > { %2594 = vmatpush1.bf16.msra.mxu1 %v3428_v32 }
 0x554   : > { %2595 = vmatprep.subr.bf16.mxu1 %v3433_v25 }
 0x557   : > { %2596 = vmatpush1.bf16.msra.mxu1 %v3431_v30 }
 0x558   : > { %2597 = vmatprep.subr.bf16.mxu1 %v3436_v33 }
 0x55b   : > { %2598 = vmatpush1.bf16.msra.mxu1 %v3434_v23 }
 0x55c   : > { %2599 = vmatprep.subr.bf16.mxu1 %v3439_v26 }
 0x55f   : > { %2600 = vmatpush1.bf16.msra.mxu1 %v3437_v38 }
 0x560   : > { %2601 = vmatprep.subr.bf16.mxu1 %v3442_v41 }
 0x563   : > { %2602 = vmatpush1.bf16.msra.mxu1 %v3440_v42 }
 0x564   : > { %2603 = vmatprep.subr.bf16.mxu1 %v3445_v43 }
 0x567   : > { %2604 = vmatpush1.bf16.msra.mxu1 %v3443_v46 }
 0x568   : > { %2605 = vmatprep.subr.bf16.mxu1 %v3448_v47 }
 0x56b   : > { %2606 = vmatpush1.bf16.msra.mxu1 %v3446_v48 }
 0x56c   : > { %2607 = vmatprep.subr.bf16.mxu1 %v3451_v49 }
 0x56f   : > { %2608 = vmatpush1.bf16.msra.mxu1 %v3449_v37 }
 0x570   : > { %2609 = vmatprep.subr.bf16.mxu1 %v3454_v36 }
 0x573   : > { %2610 = vmatpush1.bf16.msra.mxu1 %v3452_v39 }
 0x5f9   : > { %v1731_v40 = vpop.f32.mrb[20].mxu1 }
 0x5fa   : > { %v3268_v44 = vpop.f32.mrb[21].mxu1 }
 0x5fb   : > { %v1734_v45 = vpop.f32.mrb[22].mxu1 }
 0x5fc   : > { %v3269_v50 = vpop.f32.mrb[23].mxu1 }
 0x601   : > { %v1775_v51 = vpop.f32.mrb[24].mxu0 }
 0x602   : > { %v3274_v52 = vpop.f32.mrb[25].mxu0 }
 0x603   : > { %v1778_v53 = vpop.f32.mrb[26].mxu0 }
 0x604   : > { %v3275_v54 = vpop.f32.mrb[27].mxu0 }
 0x609   : > { %v1819_v55 = vpop.f32.mrb[24].mxu1  ;;  %v1863_v57 = vpop.f32.mrb[28].mxu0 }
 0x60a   : > { %v2046_v1 = vcombine.low %v1731_v40, %v1819_v55  ;;  %v2047_v0 = vcombine.high %v1731_v40, %v1819_v55  ;;  %v2062_v56 = vcombine.low %v1775_v51, %v1863_v57  ;;  %v2063_v59 = vcombine.high %v1775_v51, %v1863_v57  ;;  %v3280_v60 = vpop.f32.mrb[25].mxu1  ;;  %v3286_v61 = vpop.f32.mrb[29].mxu0 }
 0x60b   : > { %v1822_v62 = vpop.f32.mrb[26].mxu1  ;;  %v1866_v63 = vpop.f32.mrb[30].mxu0 }
 0x60c   : > { %v2054_v3 = vrot.slane %v2046_v1, %v3917_v6  ;;  %v2061_v4 = vrot.slane %v2047_v0, %v3917_v6  ;;  %v2070_v5 = vrot.slane %v2062_v56, %v3917_v6  ;;  %v2077_v7 = vrot.slane %v2063_v59, %v3917_v6  ;;  %v3281_v12 = vpop.f32.mrb[27].mxu1  ;;  %v3287_v15 = vpop.f32.mrb[31].mxu0 }
 0x60d   : > { %v2182_v13 = vcombine.low %v1734_v45, %v1822_v62  ;;  %v2183_v14 = vcombine.high %v1734_v45, %v1822_v62  ;;  %v2198_v16 = vcombine.low %v1778_v53, %v1866_v63  ;;  %v2199_v17 = vcombine.high %v1778_v53, %v1866_v63 }
 0x60e   : > { %v2110_v18 = vcombine.low %v2054_v3, %v2070_v5  ;;  %v2111_v19 = vcombine.high %v2054_v3, %v2070_v5  ;;  %v2126_v20 = vcombine.low %v2061_v4, %v2077_v7  ;;  %v2127_v21 = vcombine.high %v2061_v4, %v2077_v7 }
 0x60f   : > { %v2190_v22 = vrot.slane %v2182_v13, %v3917_v6  ;;  %v2197_v34 = vrot.slane %v2183_v14, %v3917_v6  ;;  %v2206_v24 = vrot.slane %v2198_v16, %v3917_v6  ;;  %v2213_v27 = vrot.slane %v2199_v17, %v3917_v6  ;;  %v3455_v14 = vld [vmem:[%s4434_s7 + $0xc0] ss:$8 sps:$4 sm:$0xff]   ;;  %v3457_v16 = vld [vmem:[%s4434_s7 + $0xc4] ss:$8 sps:$4 sm:$0xff]  }
 0x610   : > { %v4191_v46 = vrot.slane %v2110_v18, %v3945_v58  ;;  %v4194_v47 = vrot.slane %v2111_v19, %v3945_v58  ;;  %v4197_v48 = vrot.slane %v2126_v20, %v3945_v58  ;;  %v4200_v49 = vrot.slane %v2127_v21, %v3945_v58  ;;  %2611 = vmatprep.subr.bf16.mxu1 %v3457_v16 }
 0x611   : > { %v2246_v28 = vcombine.low %v2190_v22, %v2206_v24  ;;  %v2247_v29 = vcombine.high %v2190_v22, %v2206_v24  ;;  %v2262_v32 = vcombine.low %v2197_v34, %v2213_v27  ;;  %v2263_v25 = vcombine.high %v2197_v34, %v2213_v27  ;;  %v1907_v30 = vpop.f32.mrb[28].mxu1  ;;  %v1951_v33 = vpop.f32.mrb[32].mxu0  ;;  %2612 = vmatpush1.bf16.msra.mxu1 %v3455_v14 }
 0x612   : > { %v3292_v23 = vpop.f32.mrb[29].mxu1  ;;  %v3298_v26 = vpop.f32.mrb[33].mxu0 }
 0x613   : > { %v1910_v38 = vpop.f32.mrb[30].mxu1  ;;  %v1954_v41 = vpop.f32.mrb[34].mxu0  ;;  %v4203_v52 = vrot.slane %v2246_v28, %v3945_v58  ;;  %v4206_v53 = vrot.slane %v2247_v29, %v3945_v58  ;;  %v4209_v54 = vrot.slane %v2262_v32, %v3945_v58  ;;  %v4212_v55 = vrot.slane %v2263_v25, %v3945_v58  ;;  %v3458_v23 = vld [vmem:[%s4434_s7 + $0xd0] ss:$8 sps:$4 sm:$0xff]   ;;  %v3460_v26 = vld [vmem:[%s4434_s7 + $0xd4] ss:$8 sps:$4 sm:$0xff]  }
 0x614   : > { %v3293_v42 = vpop.f32.mrb[31].mxu1  ;;  %v3299_v43 = vpop.f32.mrb[35].mxu0  ;;  %2613 = vmatprep.subr.bf16.mxu1 %v3460_v26 }
 0x615   : > { %2614 = vmatpush1.bf16.msra.mxu1 %v3458_v23 }
 0x619   : > { %v1995_v37 = vpop.f32.mrb[32].mxu1  ;;  %v2039_v36 = vpop.f32.mrb[36].mxu0 }
 0x61a   : > { %v2078_v39 = vcombine.low %v1907_v30, %v1995_v37  ;;  %v2079_v40 = vcombine.high %v1907_v30, %v1995_v37  ;;  %v2094_v44 = vcombine.low %v1951_v33, %v2039_v36  ;;  %v2095_v45 = vcombine.high %v1951_v33, %v2039_v36  ;;  %v3304_v50 = vpop.f32.mrb[33].mxu1  ;;  %v3310_v51 = vpop.f32.mrb[37].mxu0 }
 0x61b   : > { %v1998_v57 = vpop.f32.mrb[34].mxu1  ;;  %v2042_v1 = vpop.f32.mrb[38].mxu0 }
 0x61c   : > { %v2086_v0 = vrot.slane %v2078_v39, %v3917_v6  ;;  %v2093_v56 = vrot.slane %v2079_v40, %v3917_v6  ;;  %v2102_v59 = vrot.slane %v2094_v44, %v3917_v6  ;;  %v2109_v60 = vrot.slane %v2095_v45, %v3917_v6  ;;  %v3305_v61 = vpop.f32.mrb[35].mxu1  ;;  %v3311_v62 = vpop.f32.mrb[39].mxu0 }
 0x61d   : > { %v2214_v63 = vcombine.low %v1910_v38, %v1998_v57  ;;  %v2215_v3 = vcombine.high %v1910_v38, %v1998_v57  ;;  %v2230_v4 = vcombine.low %v1954_v41, %v2042_v1  ;;  %v2231_v5 = vcombine.high %v1954_v41, %v2042_v1  ;;  %v3463_v57 = vld [vmem:[%s4434_s7 + $0xe4] ss:$8 sps:$4 sm:$0xff]  }
 0x61e   : > { %v2142_v7 = vcombine.low %v2086_v0, %v2102_v59  ;;  %v2143_v12 = vcombine.high %v2086_v0, %v2102_v59  ;;  %v2158_v15 = vcombine.low %v2093_v56, %v2109_v60  ;;  %v2159_v13 = vcombine.high %v2093_v56, %v2109_v60  ;;  %2615 = vmatprep.subr.bf16.mxu1 %v3463_v57  ;;  %v2654_v57 = vld [vmem:[#allocation2 + $0x1] ss:$8 sm:$0x3] }
 0x61f   : > { %v2222_v17 = vrot.slane %v2214_v63, %v3917_v6  ;;  %v2229_v18 = vrot.slane %v2215_v3, %v3917_v6  ;;  %v2238_v19 = vrot.slane %v2230_v4, %v3917_v6  ;;  %v2245_v20 = vrot.slane %v2231_v5, %v3917_v6 }
 0x620   : > { %v4229_v21 = vrot.slane %v2142_v7, %v3945_v58  ;;  %v2157_v22 = vrot.slane %v2143_v12, %v3945_v58  ;;  %v2166_v34 = vrot.slane %v2158_v15, %v3945_v58  ;;  %v2173_v24 = vrot.slane %v2159_v13, %v3945_v58 }
 0x621   : > { %v2278_v27 = vcombine.low %v2222_v17, %v2238_v19  ;;  %v2279_v28 = vcombine.high %v2222_v17, %v2238_v19  ;;  %v2294_v29 = vcombine.low %v2229_v18, %v2245_v20  ;;  %v2295_v32 = vcombine.high %v2229_v18, %v2245_v20 }
 0x622   : > { %v2174_v25 = vcombine.low %v4191_v46, %v4229_v21  ;;  %v2177_v6 = vcombine.high %v4194_v47, %v2157_v22  ;;  %v2175_v30 = vcombine.high %v4191_v46, %v4229_v21  ;;  %v2179_v33 = vcombine.high %v4197_v48, %v2166_v34 }
 0x623   : > { %v2286_v38 = vrot.slane %v2278_v27, %v3945_v58  ;;  %v2293_v41 = vrot.slane %v2279_v28, %v3945_v58  ;;  %v2302_v42 = vrot.slane %v2294_v29, %v3945_v58  ;;  %v2309_v43 = vrot.slane %v2295_v32, %v3945_v58 }
 0x624   : > { %v2176_v46 = vcombine.low %v4194_v47, %v2157_v22  ;;  %v2181_v37 = vcombine.high %v4200_v49, %v2173_v24  ;;  %v2178_v36 = vcombine.low %v4197_v48, %v2166_v34  ;;  %v2180_v39 = vcombine.low %v4200_v49, %v2173_v24  ;;  %v3461_v49 = vld [vmem:[%s4434_s7 + $0xe0] ss:$8 sps:$4 sm:$0xff]  }
 0x625   : > { %v2310_v40 = vcombine.low %v4203_v52, %v2286_v38  ;;  %v2313_v44 = vcombine.high %v4206_v53, %v2293_v41  ;;  %v2311_v45 = vcombine.high %v4203_v52, %v2286_v38  ;;  %v2315_v50 = vcombine.high %v4209_v54, %v2302_v42  ;;  %2616 = vmatpush1.bf16.msra.mxu1 %v3461_v49  ;;  %v2634_v49 = vld [vmem:[#allocation2] ss:$8 sm:$0x3] }
 0x626   : > { %v2312_v58 = vcombine.low %v4206_v53, %v2293_v41  ;;  %v2317_v47 = vcombine.high %v4212_v55, %v2309_v43  ;;  %v2314_v51 = vcombine.low %v4209_v54, %v2302_v42  ;;  %v2316_v48 = vcombine.low %v4212_v55, %v2309_v43  ;;  %v3464_v54 = vld [vmem:[%s4434_s7 + $0xf0] ss:$8 sps:$4 sm:$0xff]   ;;  %v3466_v55 = vld [vmem:[%s4434_s7 + $0xf4] ss:$8 sps:$4 sm:$0xff]  }
 0x627   : > { %v3392_v52 = vpack.i.bf16 %v2177_v6, %v2313_v44  ;;  %v3382_v1 = vpack.i.bf16 %v2175_v30, %v2311_v45  ;;  %v3402_v0 = vpack.i.bf16 %v2179_v33, %v2315_v50  ;;  %2617 = vmatprep.subr.bf16.mxu1 %v3466_v55  ;;  %v2816_v50 = vld [vmem:[%s4436_s9] sm:$0xff] }
 0x628   : > { %v3387_v56 = vpack.i.bf16 %v2176_v46, %v2312_v58  ;;  %v3412_v59 = vpack.i.bf16 %v2181_v37, %v2317_v47  ;;  %v3397_v53 = vpack.i.bf16 %v2178_v36, %v2314_v51  ;;  %v3407_v60 = vpack.i.bf16 %v2180_v39, %v2316_v48  ;;  %v2817_v58 = vld [vmem:[%s4436_s9 + $0x8] sm:$0xff]  ;;  %v2818_v47 = vld [vmem:[%s4436_s9 + $0x10] sm:$0xff]  ;;  %v2819_v51 = vld [vmem:[%s4436_s9 + $0x18] sm:$0xff] }
 0x629   : > { %3393 = vrot.lane.b32.xlu0 %v3392_v52, %s3561_s16  ;;  %3383 = vrot.lane.b32.xlu1 %v3382_v1, %s3548_s18  ;;  %s4474_s16 = smov 64   ;;  %v2639_v1 = vrot.slane %v2634_v49, %v3783_v10 }
 0x62a   : > { %2618 = vmatpush1.bf16.msra.mxu1 %v3464_v54 }
 0x62d   : > { %3403 = vrot.lane.b32.xlu0 %v3402_v0, %s3559_s26  ;;  %3388 = vrot.lane.b32.xlu1 %v3387_v56, %s3562_s29  ;;  %s4476_s26 = smov 17   ;;  %s4477_s29 = smov 15   ;;  %v2643_v0 = vrot.slane %v2634_v49, %v3786_v11  ;;  %v2659_v56 = vrot.slane %v2654_v57, %v3783_v10  ;;  %v2768_v49 = vld [vmem:[#allocation2 + $0x7] ss:$8 sm:$0x3] }
 0x631   : > { %3413 = vrot.lane.b32.xlu0 %v3412_v59, %s3555_s27  ;;  %3398 = vrot.lane.b32.xlu1 %v3397_v53, %s4474_s16  ;;  %v2663_v59 = vrot.slane %v2654_v57, %v3786_v11  ;;  %s466_s16 = scalar_lea.vmem %s4440_s13, %s4496_s28 }
 0x635   : > { %3408 = vrot.lane.b32.xlu1 %v3407_v60, %s4475_s22 }
 0x69b   : > { %v3394_v61 = vpop.permute.xlu0 %3393  ;;  %v3384_v62 = vpop.permute.xlu1 %3383 }
 0x69c   : > { %v3386_v63 = vunpack.i.h.bf16 %v3384_v62  ;;  %v3385_v3 = vunpack.i.l.bf16 %v3384_v62  ;;  %v3396_v17 = vunpack.i.h.bf16 %v3394_v61  ;;  %v3395_v18 = vunpack.i.l.bf16 %v3394_v61 }
 0x69e   : > { %v2374_v15 = vsel %vm1354_vm15, %v2174_v25, %v3386_v63  ;;  %v2386_v13 = vsel %vm1354_vm15, %v2310_v40, %v3385_v3  ;;  %vm2382_vm15 = vcmask 785408  }
 0x69f   : > { %v3389_v4 = vpop.permute.xlu1 %3388  ;;  %v3404_v5 = vpop.permute.xlu0 %3403 }
 0x6a0   : > { %v3391_v7 = vunpack.i.h.bf16 %v3389_v4  ;;  %v3390_v12 = vunpack.i.l.bf16 %v3389_v4  ;;  %v3406_v29 = vunpack.i.h.bf16 %v3404_v5  ;;  %v3405_v32 = vunpack.i.l.bf16 %v3404_v5 }
 0x6a2   : > { %v2375_v14 = vsel %vm790_vm10, %v2374_v15, %v3391_v7  ;;  %v2387_v16 = vsel %vm790_vm10, %v2386_v13, %v3390_v12  ;;  %v2674_v12 = vld [vmem:[#allocation2 + $0x2] ss:$8 sm:$0x3]  ;;  %v2694_v15 = vld [vmem:[#allocation2 + $0x3] ss:$8 sm:$0x3] }
 0x6a3   : > { %v3399_v19 = vpop.permute.xlu1 %3398  ;;  %v2377_v22 = vsel %vm2376_vm5, %v2375_v14, %v3396_v17  ;;  %v2388_v34 = vsel %vm2376_vm5, %v2387_v16, %v3395_v18  ;;  %v3414_v24 = vpop.permute.xlu0 %3413  ;;  %v2708_v17 = vld [vmem:[#allocation2 + $0x4] ss:$8 sm:$0x3]  ;;  %v2679_v18 = vrot.slane %v2674_v12, %v3783_v10 }
 0x6a4   : > { %v3401_v20 = vunpack.i.h.bf16 %v3399_v19  ;;  %v3400_v21 = vunpack.i.l.bf16 %v3399_v19  ;;  %v3416_v33 = vunpack.i.h.bf16 %v3414_v24  ;;  %v3415_v23 = vunpack.i.l.bf16 %v3414_v24 }
 0x6a5   : > { %v2683_v19 = vrot.slane %v2674_v12, %v3786_v11 }
 0x6a6   : > { %v2379_v27 = vsel %vm2378_vm6, %v2377_v22, %v3401_v20  ;;  %v2389_v28 = vsel %vm2378_vm6, %v2388_v34, %v3400_v21  ;;  %v2699_v20 = vrot.slane %v2694_v15, %v3783_v10  ;;  %v2703_v21 = vrot.slane %v2694_v15, %v3786_v11  ;;  %v2728_v22 = vld [vmem:[#allocation2 + $0x5] ss:$8 sm:$0x3] }
 0x6a7   : > { %v3409_v25 = vpop.permute.xlu1 %3408  ;;  %v2381_v26 = vsel %vm2380_vm12, %v2379_v27, %v3406_v29  ;;  %v2390_v38 = vsel %vm2380_vm12, %v2389_v28, %v3405_v32  ;;  %v2713_v29 = vrot.slane %v2708_v17, %v3783_v10  ;;  %v2717_v32 = vrot.slane %v2708_v17, %v3786_v11 }
 0x6a8   : > { %v3411_v6 = vunpack.i.h.bf16 %v3409_v25  ;;  %v3410_v30 = vunpack.i.l.bf16 %v3409_v25  ;;  %vm3005_vm6 = vcmp.eq.s32.totalorder %v3905_v35, %v3780_v9  ;;  %vm3004_vm12 = vcmp.eq.s32.totalorder %v3778_v8, %v3780_v9 }
 0x6aa   : > { %v2383_v41 = vsel %vm2382_vm15, %v2381_v26, %v3411_v6  ;;  %v2391_v42 = vsel %vm2382_vm15, %v2390_v38, %v3410_v30  ;;  %v2733_v30 = vrot.slane %v2728_v22, %v3783_v10 }
 0x6ab   : > { %v2392_v43 = vsel %vm2384_vm11, %v2391_v42, %v3415_v23  ;;  %v2385_v46 = vsel %vm2384_vm11, %v2383_v41, %v3416_v33  ;;  %v2737_v33 = vrot.slane %v2728_v22, %v3786_v11  ;;  %v3467_v22 = vld [vmem:[%s4435_s8] sm:$0xff]  }
 0x6ac   : > { %v2394_v37 = vpack.c.bf16 %v2392_v43, %v2392_v43  ;;  %v2393_v36 = vpack.c.bf16 %v2385_v46, %v2385_v46 }
 0x6ae   : > { %2619 = vmatprep.mubr.bf16.mxu1 %v2394_v37 }
 0x6af   : > { %2620 = vmatmul.mubr.bf16.vlgmr.msra.gmra.mrb[36].mxu1 %v2393_v36 }
 0x782   : > { %v4285_v39 = vpop.f32.mrb[36].mxu1 }
 0x783   : > { %2628 = vrot.lane.b32.xlu1 %v4285_v39, %s4476_s26  ;;  %v4289_v40 = vpop.f32.mrb[37].mxu1 }
 0x784   : > { %2630 = vrot.lane.b32.xlu0 %v4289_v40, %s4476_s26  ;;  %v2625_v44 = vpop.f32.mrb[38].mxu1 }
 0x785   : > { %v2626_v45 = vpop.f32.mrb[39].mxu1 }
 0x786   : > { %v2720_v45 = vmul.f32 %v2713_v29, %v4285_v39 }
 0x787   : > { %2648 = vrot.lane.b32.xlu1 %v4285_v39, %s3548_s18 }
 0x788   : > { %2650 = vrot.lane.b32.xlu0 %v4289_v40, %s3548_s18  ;;  %s4481_s18 = smov 111  }
 0x78b   : > { %2668 = vrot.lane.b32.xlu1 %v4285_v39, %s4477_s29 }
 0x78c   : > { %2670 = vrot.lane.b32.xlu0 %v4289_v40, %s4477_s29 }
 0x78f   : > { %2688 = vrot.lane.b32.xlu1 %v4285_v39, %s4478_s14 }
 0x790   : > { %2690 = vrot.lane.b32.xlu0 %v4289_v40, %s4478_s14 }
 0x793   : > { %2722 = vrot.lane.b32.xlu1 %v4285_v39, %s4479_s19 }
 0x794   : > { %2724 = vrot.lane.b32.xlu0 %v4289_v40, %s4479_s19 }
 0x797   : > { %2742 = vrot.lane.b32.xlu1 %v4285_v39, %s4480_s20 }
 0x798   : > { %2744 = vrot.lane.b32.xlu0 %v4289_v40, %s4480_s20 }
 0x79b   : > { %2762 = vrot.lane.b32.xlu1 %v4285_v39, %s3555_s27 }
 0x79c   : > { %2764 = vrot.lane.b32.xlu0 %v4289_v40, %s3555_s27 }
 0x79f   : > { %2782 = vrot.lane.b32.xlu1 %v4285_v39, %s4481_s18  ;;  %v2777_v39 = vrot.slane %v2768_v49, %v3786_v11 }
 0x7a0   : > { %2784 = vrot.lane.b32.xlu0 %v4289_v40, %s4481_s18 }
 0x7a3   : > { %2822 = vperm.xlu1 %3380, %v2816_v50  }
 0x7a4   : > { %2827 = vperm.xlu0 %3381, %v2817_v58  }
 0x7a7   : > { %2832 = vperm.xlu1 %3380, %v2818_v47   ;;  %v2721_v47 = vmul.f32 %v2717_v32, %v4289_v40 }
 0x7a8   : > { %2837 = vperm.xlu0 %3381, %v2819_v51  }
 0x7f5   : > { %v2629_v48 = vpop.permute.xlu1 %2628 }
 0x7f6   : > { %v2631_v52 = vpop.permute.xlu0 %2630 }
 0x7f7   : > { %v2632_v53 = vsel %vm476_vm1, %v2629_v48, %v2631_v52  ;;  %v2633_v60 = vsel %vm476_vm1, %v2631_v52, %v2629_v48  ;;  %v2748_v48 = vld [vmem:[#allocation2 + $0x6] ss:$8 sm:$0x3] }
 0x7f8   : > { %v2646_v63 = vmul.f32 %v2639_v1, %v2633_v60  ;;  %v2647_v3 = vmul.f32 %v2643_v0, %v2632_v53  ;;  %v2753_v0 = vrot.slane %v2748_v48, %v3783_v10  ;;  %v2788_v53 = vld [vmem:[#allocation2 + $0x10] ss:$8 sm:$0x3] }
 0x7f9   : > { %v2649_v54 = vpop.permute.xlu1 %2648 }
 0x7fa   : > { %v2651_v55 = vpop.permute.xlu0 %2650 }
 0x7fb   : > { %v2652_v61 = vsel %vm497_vm0, %v2649_v54, %v2651_v55  ;;  %v2653_v62 = vsel %vm497_vm0, %v2651_v55, %v2649_v54  ;;  %vm4482_vm0 = vcmp.lt.s32.totalorder %v3780_v9, 113 }
 0x7fc   : > { %v2666_v4 = vmul.f32 %v2659_v56, %v2653_v62  ;;  %v2667_v5 = vmul.f32 %v2663_v59, %v2652_v61  ;;  %v2757_v56 = vrot.slane %v2748_v48, %v3786_v11  ;;  %v2773_v59 = vrot.slane %v2768_v49, %v3783_v10  ;;  %vm4483_vm1 = vmmov %vm4482_vm0 }
 0x7fd   : > { %v2669_v7 = vpop.permute.xlu1 %2668 }
 0x7fe   : > { %v2802_v13 = vpack.c.bf16 %v2666_v4, %v2646_v63  ;;  %v2671_v14 = vpop.permute.xlu0 %2670  ;;  %v2803_v16 = vpack.c.bf16 %v2667_v5, %v2647_v3  ;;  %v2793_v63 = vrot.slane %v2788_v53, %v3783_v10  ;;  %v2797_v3 = vrot.slane %v2788_v53, %v3786_v11 }
 0x7ff   : > { %v2672_v34 = vsel %vm519_vm2, %v2669_v7, %v2671_v14  ;;  %v2673_v24 = vsel %vm519_vm2, %v2671_v14, %v2669_v7  ;;  %vm4484_vm2 = vcmp.lt.s32.totalorder %v3780_v9, 112 }
 0x800   : > { %2862 = vmatprep.subr.bf16.mxu0 %v2803_v16  ;;  %v2686_v23 = vmul.f32 %v2679_v18, %v2673_v24  ;;  %v2687_v26 = vmul.f32 %v2683_v19, %v2672_v34  ;;  %v3468_v34 = vld [vmem:[%s4435_s8 + $0x8] sm:$0xff]  }
 0x801   : > { %v2689_v27 = vpop.permute.xlu1 %2688  ;;  %2863 = vmatpush1.bf16.msra.mxu0 %v2802_v13 }
 0x802   : > { %v2691_v28 = vpop.permute.xlu0 %2690 }
 0x803   : > { %v2692_v25 = vsel %vm541_vm3, %v2689_v27, %v2691_v28  ;;  %v2693_v6 = vsel %vm541_vm3, %v2691_v28, %v2689_v27  ;;  %vm4485_vm3 = vmmov %vm4484_vm2 }
 0x804   : > { %v2706_v38 = vmul.f32 %v2699_v20, %v2693_v6  ;;  %v2707_v41 = vmul.f32 %v2703_v21, %v2692_v25 }
 0x805   : > { %v2723_v42 = vpop.permute.xlu1 %2722 }
 0x806   : > { %v2804_v43 = vpack.c.bf16 %v2706_v38, %v2686_v23  ;;  %v2725_v46 = vpop.permute.xlu0 %2724  ;;  %v2805_v37 = vpack.c.bf16 %v2707_v41, %v2687_v26 }
 0x807   : > { %v2726_v36 = vsel %vm578_vm4, %v2723_v42, %v2725_v46  ;;  %v2727_v44 = vsel %vm578_vm4, %v2725_v46, %v2723_v42  ;;  %vm4486_vm4 = vcmp.lt.s32.totalorder %v3780_v9, 111 }
 0x808   : > { %v2740_v50 = vmul.f32 %v2733_v30, %v2726_v36  ;;  %v2741_v58 = vmul.f32 %v2737_v33, %v2727_v44  ;;  %2864 = vmatprep.subr.bf16.mxu0 %v2805_v37  ;;  %vm4487_vm9 = vmmov %vm4486_vm4 }
 0x809   : > { %v2743_v51 = vpop.permute.xlu1 %2742  ;;  %2865 = vmatpush1.bf16.msra.mxu0 %v2804_v43 }
 0x80a   : > { %v2806_v57 = vpack.c.bf16 %v2740_v50, %v2720_v45  ;;  %v2745_v52 = vpop.permute.xlu0 %2744  ;;  %v2807_v1 = vpack.c.bf16 %v2741_v58, %v2721_v47 }
 0x80b   : > { %v2746_v40 = vsel %vm4482_vm0, %v2743_v51, %v2745_v52  ;;  %v2747_v60 = vsel %vm4483_vm1, %v2745_v52, %v2743_v51 }
 0x80c   : > { %2866 = vmatprep.subr.bf16.mxu0 %v2807_v1  ;;  %v2760_v4 = vmul.f32 %v2753_v0, %v2746_v40  ;;  %v2761_v5 = vmul.f32 %v2757_v56, %v2747_v60 }
 0x80d   : > { %v2763_v54 = vpop.permute.xlu1 %2762  ;;  %2867 = vmatpush1.bf16.msra.mxu0 %v2806_v57 }
 0x80e   : > { %v2765_v55 = vpop.permute.xlu0 %2764 }
 0x80f   : > { %v2766_v61 = vsel %vm4484_vm2, %v2763_v54, %v2765_v55  ;;  %v2767_v62 = vsel %vm4485_vm3, %v2765_v55, %v2763_v54 }
 0x810   : > { %v2780_v7 = vmul.f32 %v2773_v59, %v2766_v61  ;;  %v2781_v12 = vmul.f32 %v2777_v39, %v2767_v62  ;;  %v3469_v59 = vld [vmem:[#allocation4] sm:$0xff]  }
 0x811   : > { %v2783_v15 = vpop.permute.xlu1 %2782  ;;  %v2988_v61 = vld [vmem:[%s4438_s11] sm:$0xff] }
 0x812   : > { %v2808_v13 = vpack.c.bf16 %v2780_v7, %v2760_v4  ;;  %v2785_v14 = vpop.permute.xlu0 %2784  ;;  %v2809_v16 = vpack.c.bf16 %v2781_v12, %v2761_v5  ;;  %v2989_v4 = vld [vmem:[%s4438_s11 + $0x8] sm:$0xff] }
 0x813   : > { %v2786_v17 = vsel %vm4486_vm4, %v2783_v15, %v2785_v14  ;;  %v2787_v18 = vsel %vm4487_vm9, %v2785_v14, %v2783_v15  ;;  %v2993_v15 = vld [vmem:[%s4439_s12 + $0x8] sm:$0xff] }
 0x814   : > { %v2800_v19 = vmul.f32 %v2793_v63, %v2786_v17  ;;  %v2801_v20 = vmul.f32 %v2797_v3, %v2787_v18  ;;  %2868 = vmatprep.subr.bf16.mxu0 %v2809_v16  ;;  %v2992_v3 = vld [vmem:[%s4439_s12] sm:$0xff] }
 0x815   : > { %2869 = vmatpush1.bf16.msra.mxu0 %v2808_v13 }
 0x816   : > { %v2810_v10 = vpack.c.bf16 %v2800_v19, %v2800_v19  ;;  %v2811_v11 = vpack.c.bf16 %v2801_v20, %v2801_v20 }
 0x818   : > { %3176 = vmatprep.subr.msk.bf16.mxu0 %vm4488_vm13, %v2811_v11  ;;  %v2857_v21 = vsel %vm4489_vm14, %v2810_v10, 0  ;;  %v3003_v10 = vadd.s32 16, %v3778_v8 }
 0x819   : > { %2871 = vmatpush1.bf16.msra.mxu0 %v2857_v21 }
 0x81a   : > { %vm3006_vm15 = vcmp.eq.s32.totalorder %v3003_v10, %v3780_v9 }
 0x81c   : > { %3177 = vmatmul.mubr.msk.bf16.vlgmr.msra.gmra.mrb[40].mxu0 %vm4490_vm7, %v3467_v22 }
 0x81d   : > { %2904 = vmatprep.mubr.bf16.mxu0 %v3554_v2 }
 0x822   : > { %v2823_v24 = vpop.permute.xlu1 %2822 }
 0x823   : > { %v2828_v32 = vpop.permute.xlu0 %2827 }
 0x824   : > { %3178 = vmatmul.mubr.msk.bf16.gmra.mrb[44].mxu0 %vm4491_vm8, %v3468_v34 }
 0x825   : > { %2969 = vmatprep.mubr.bf16.mxu0 %v3554_v2 }
 0x826   : > { %v2833_v46 = vpop.permute.xlu1 %2832 }
 0x827   : > { %v2838_v45 = vpop.permute.xlu0 %2837 }
 0x8ef   : > { %v2896_v27 = vpop.f32.mrb[40].mxu0 }
 0x8f0   : > { %v2897_v28 = vadd.f32 %v2896_v27, %v2823_v24  ;;  %v2898_v29 = vpop.f32.mrb[41].mxu0 }
 0x8f1   : > { %v2899_v25 = vadd.f32 %v2898_v29, %v2823_v24  ;;  %v2900_v6 = vpop.f32.mrb[42].mxu0 }
 0x8f2   : > { %v2901_v30 = vadd.f32 %v2900_v6, %v2828_v32  ;;  %v2902_v33 = vpop.f32.mrb[43].mxu0  ;;  %v2915_v26 = vmax.f32 %v2897_v28, 0.0 }
 0x8f3   : > { %v2903_v23 = vadd.f32 %v2902_v33, %v2828_v32  ;;  %v2916_v41 = vmax.f32 %v2899_v25, 0.0 }
 0x8f4   : > { %v2917_v38 = vmax.f32 %v2901_v30, 0.0 }
 0x8f5   : > { %v2918_v42 = vmax.f32 %v2903_v23, 0.0 }
 0x8f6   : > { %v2925_v43 = vpack.c.bf16 %v2917_v38, %v2915_v26 }
 0x8f7   : > { %v2926_v37 = vpack.c.bf16 %v2918_v42, %v2916_v41  ;;  %v2906_v36 = vpop.f32.mrb[44].mxu0 }
 0x8f8   : > { %v2907_v44 = vadd.f32 %v2906_v36, %v2833_v46  ;;  %v2908_v2 = vpop.f32.mrb[45].mxu0 }
 0x8f9   : > { %v2909_v50 = vadd.f32 %v2908_v2, %v2833_v46  ;;  %v2910_v58 = vpop.f32.mrb[46].mxu0  ;;  %2937 = vmatprep.subr.bf16.mxu0 %v2926_v37 }
 0x8fa   : > { %v2911_v47 = vadd.f32 %v2910_v58, %v2838_v45  ;;  %v2912_v51 = vpop.f32.mrb[47].mxu0  ;;  %2938 = vmatpush1.bf16.msra.mxu0 %v2925_v43  ;;  %v2919_v49 = vmax.f32 %v2907_v44, 0.0 }
 0x8fb   : > { %v2913_v48 = vadd.f32 %v2912_v51, %v2838_v45  ;;  %v2920_v52 = vmax.f32 %v2909_v50, 0.0 }
 0x8fc   : > { %v2921_v57 = vmax.f32 %v2911_v47, 0.0 }
 0x8fd   : > { %v2922_v1 = vmax.f32 %v2913_v48, 0.0 }
 0x8fe   : > { %v2927_v0 = vpack.c.bf16 %v2921_v57, %v2919_v49 }
 0x8ff   : > { %v2928_v56 = vpack.c.bf16 %v2922_v1, %v2920_v52 }
 0x901   : > { %2939 = vmatprep.subr.bf16.mxu0 %v2928_v56 }
 0x902   : > { %2940 = vmatpush1.bf16.msra.mxu0 %v2927_v0 }
 0x905   : > { %3180 = vmatmul.mubr.msk.bf16.vlgmr.msra.gmra.mrb[48].mxu0 %vm790_vm10, %v3469_v59  ;;  %vm4492_vm10 = vcmask 1041408  }
 0x906   : > { %vm4493_vm5 = vmmov %vm4492_vm10 }
 0x907   : > { %vm4494_vm11 = vmmov %vm4493_vm5 }
 0x9d8   : > { %v2971_v39 = vpop.f32.mrb[48].mxu0 }
 0x9d9   : > { %v2973_v53 = vpop.f32.mrb[49].mxu0 }
 0x9da   : > { %v2980_v40 = vadd.f32 %v2973_v53, %v2971_v39  ;;  %v2975_v60 = vpop.f32.mrb[50].mxu0 }
 0x9db   : > { %v2977_v54 = vpop.f32.mrb[51].mxu0 }
 0x9dc   : > { %v2983_v55 = vadd.f32 %v2977_v54, %v2975_v60  ;;  %2981 = vadd.xlane.f32.xlu1 %v2980_v40 }
 0x9de   : > { %2984 = vadd.xlane.f32.xlu0 %v2983_v55 }
 0xa69   : > { %v2982_v62 = vpop.xlane.xlu1 %2981 }
 0xa6a   : > { %v2986_v63 = vmul.f32 0.00390625, %v2982_v62 }
 0xa6b   : > { %v2985_v5 = vpop.xlane.xlu0 %2984 }
 0xa6c   : > { %v2990_v7 = vadd.f32 %v2988_v61, %v2986_v63  ;;  %v2987_v12 = vmul.f32 0.00390625, %v2985_v5 }
 0xa6e   : > { %v2994_v13 = vmul.f32 %v2992_v3, %v2990_v7  ;;  %v2991_v14 = vadd.f32 %v2989_v4, %v2987_v12 }
 0xa70   : > { %v2998_v16 = vrot.slane %v2994_v13, 6  ;;  %v2995_v17 = vmul.f32 %v2993_v15, %v2991_v14 }
 0xa72   : > { %v2999_v18 = vrot.slane %v2995_v17, 6  ;;  %v3002_v19 = vsel %vm4492_vm10, %v3873_v31, %v2998_v16 }
 0xa73   : > { %3009 = vperm.xlu0 %3381, %v3002_v19  }
 0xa74   : > { %v3000_v20 = vsel %vm4493_vm5, %v2998_v16, %v2999_v18 }
 0xa75   : > { %3013 = vperm.xlu1 %3380, %v3000_v20  }
 0xa79   : > { %3017 = vperm.xlu1 %3380, %v2999_v18  }
 0xaf2   : > { %v3010_v21 = vpop.permute.xlu0 %3009 }
 0xaf3   : > { %v3020_v31 = vsel %vm3004_vm12, %v3010_v21, 0.0 }
 0xaf4   : > { %v3014_v11 = vpop.permute.xlu1 %3013 }
 0xaf5   : > { %v3021_v22 = vsel %vm3005_vm6, %v3014_v11, 0.0 }
 0xaf6   : > { %v3023_v24 = vadd.f32 %v3021_v22, %v3020_v31 }
 0xaf8   : > { %v3018_v34 = vpop.permute.xlu1 %3017 }
 0xaf9   : > { %v3022_v27 = vsel %vm3006_vm15, %v3018_v34, 0.0 }
 0xafa   : > { %v3024_v28 = vsel %vm4494_vm11, %v3022_v27, 0.0 }
 0xafb   : > { %v3025_v29 = vadd.f32 %v3024_v28, %v3023_v24 }
 0xafd   : > { %v3026_v32 = vrot.slane %v3025_v29, 4 }
 0xaff   : > { %v3027_v25 = vadd.f32 %v3026_v32, %v3025_v29 }
 0xb01   : > { %v3028_v6 = vrot.slane %v3027_v25, 2 }
 0xb03   : > { %v3029_v35 = vadd.f32 %v3028_v6, %v3027_v25 }
 0xb05   : > { %v3030_v30 = vrot.slane %v3029_v35, 1 }
 0xb07   : > { %v3031_v8 = vadd.f32 %v3030_v30, %v3029_v35 }
 0xb09   : > { %3032 = vst [vmem:[%s466_s16] sm:$0x1] %v3031_v8 }
 0xb0a PF: > { %s25_s25 = sadd.s32 1, %s3540_s25  }
 0xb0b   : > { %p22_p5 = scmp.ge.s32.totalorder %s25_s25, 4  }
 0xb0d   :  { %24 = sbr.rel (!%p22_p5) target bundleno = 2 (0x2), region = 119 }
 0xb14   :  { %3050 = vsyncpa [#allocation3], 1 }
 0xb15   :  { %3052 = vsyncpa [#allocation3 + $0x1], 1 }
 0xb16   :  { %3053 = vsyncpa [#allocation5], 1 }

</bundles_post_ra>
